<compile_context>
chip_gen: v6e
topology: v6e:2x2x1
jax: 0.10.0
libtpu: 0.0.40
codegen_flags: <defaults>
</compile_context>

<pallas_src>
import functools

import jax
import jax.numpy as jnp
from jax.experimental import pallas as pl
from jax.experimental.pallas import tpu as pltpu

LANE = 128
ROW_TILE = 512          # row tile for the 1x1-conv (matmul) stages

_VMEM_CAP = None


def _round_up(x, m):
    return (x + m - 1) // m * m


def _vmem_limit_bytes():
    """Generation-aware VMEM budget (v5e/v6e: 128 MiB, v7x: 64 MiB per TC)."""
    global _VMEM_CAP
    if _VMEM_CAP is None:
        try:
            _VMEM_CAP = int(pltpu.get_tpu_info().vmem_capacity_bytes)
        except Exception:
            _VMEM_CAP = 64 * 1024 * 1024
    return int(min(48 * 1024 * 1024, _VMEM_CAP // 2))


def _compiler_params(sem):
    return pltpu.CompilerParams(dimension_semantics=sem,
                                vmem_limit_bytes=_vmem_limit_bytes())


# ----------------------------- Pallas kernels ------------------------------

def _mm_bn_relu_kernel(x_ref, w_ref, sc_ref, sh_ref, o_ref):
    acc = jnp.dot(x_ref[...], w_ref[...], preferred_element_type=jnp.float32)
    o_ref[...] = jnp.maximum(acc * sc_ref[...] + sh_ref[...], 0.0).astype(o_ref.dtype)


def _conv2_kernel(x_ref, w_ref, sc_ref, sh_ref, o_ref, acc_ref, *, s, Wq, Mrow_p):
    """One (n, depth, kd) grid step of the 3x3x3 conv: 9 shifted matmuls.

    x_ref:  (1, s*s, flat_len, Cp)  phase-decomposed padded input plane (bf16)
    w_ref:  (27, Cp, Pp)            ALL taps, resident in VMEM (bf16)
    o_ref:  (1, 1, Mrow_p, Pp)      bf16 output rows (ho*Wq + wp layout)
    acc_ref: (Mrow_p, Pp) f32       accumulator across the kd grid axis
    """
    kd = pl.program_id(2)

    @pl.when(kd == 0)
    def _():
        acc_ref[...] = jnp.zeros_like(acc_ref)

    # Accumulate each tap straight into the VMEM accumulator (no big f32 temp).
    for kh in range(3):
        for kw in range(3):
            phase = (kh % s) * s + (kw % s)
            off = (kh // s) * Wq + (kw // s)
            a = x_ref[0, phase, off:off + Mrow_p, :]
            w = w_ref[kd * 9 + kh * 3 + kw]
            acc_ref[...] += jnp.dot(a, w, preferred_element_type=jnp.float32)

    @pl.when(kd == pl.num_programs(2) - 1)
    def _():
        out = acc_ref[...] * sc_ref[...] + sh_ref[...]
        o_ref[0, 0] = jnp.maximum(out, 0.0).astype(o_ref.dtype)


def _conv3_proj_kernel(y_ref, w3_ref, s3_ref, b3_ref,
                       xs_ref, ws_ref, ss_ref, bs_ref, o_ref):
    main = jnp.dot(y_ref[...], w3_ref[...], preferred_element_type=jnp.float32)
    main = main * s3_ref[...] + b3_ref[...]
    sc = jnp.dot(xs_ref[...], ws_ref[...], preferred_element_type=jnp.float32)
    sc = sc * ss_ref[...] + bs_ref[...]
    o_ref[...] = jnp.maximum(main + sc, 0.0).astype(o_ref.dtype)


def _conv3_id_kernel(y_ref, w3_ref, s3_ref, b3_ref, r_ref, o_ref):
    main = jnp.dot(y_ref[...], w3_ref[...], preferred_element_type=jnp.float32)
    main = main * s3_ref[...] + b3_ref[...] + r_ref[...].astype(jnp.float32)
    o_ref[...] = jnp.maximum(main, 0.0).astype(o_ref.dtype)


# ----------------------------- kernel wrappers ------------------------------

def _pick_row_tile(M):
    return min(ROW_TILE, _round_up(M, 8))


def matmul_bn_relu(x, w, scale, shift, out_dtype):
    """out = relu((x @ w) * scale + shift), tiled over rows of x."""
    M, K = x.shape
    N = w.shape[1]
    tm = _pick_row_tile(M)
    Mp = _round_up(M, tm)
    if Mp != M:
        x = jnp.pad(x, ((0, Mp - M), (0, 0)))
    out = pl.pallas_call(
        _mm_bn_relu_kernel,
        out_shape=jax.ShapeDtypeStruct((Mp, N), out_dtype),
        grid_spec=pltpu.PrefetchScalarGridSpec(
            num_scalar_prefetch=0,
            grid=(Mp // tm,),
            in_specs=[
                pl.BlockSpec((tm, K), lambda i: (i, 0)),
                pl.BlockSpec((K, N), lambda i: (0, 0)),
                pl.BlockSpec((1, N), lambda i: (0, 0)),
                pl.BlockSpec((1, N), lambda i: (0, 0)),
            ],
            out_specs=pl.BlockSpec((tm, N), lambda i: (i, 0)),
        ),
        compiler_params=_compiler_params(("parallel",)),
    )(x, w, scale.reshape(1, -1), shift.reshape(1, -1))
    return out[:M] if Mp != M else out


def conv2_3x3x3_bn_relu(y1, w2, scale, shift, stride):
    """3x3x3 conv (stride (1,s,s), pad 1) + BN + ReLU.

    y1: (N, D, H, W, Cp) bf16,  w2: (27, Cp, Pp) bf16.
    Returns (N, D, Mrow_p, Pp) bf16 where row r = ho*Wq + wp (wp < Wo valid).
    """
    N, D, H, W, Cp = y1.shape
    Pp = w2.shape[-1]
    s = stride
    Ho = (H - 1) // s + 1
    Wo = (W - 1) // s + 1

    # zero-pad D/H/W by 1 (conv padding), then pad H,W up to multiples of s.
    yp = jnp.pad(y1, ((0, 0), (1, 1), (1, 1), (1, 1), (0, 0)))
    Hp, Wp = H + 2, W + 2
    Hs, Ws = _round_up(Hp, s), _round_up(Wp, s)
    yp = jnp.pad(yp, ((0, 0), (0, 0), (0, Hs - Hp), (0, Ws - Wp), (0, 0)))
    Hq, Wq = Hs // s, Ws // s

    # Junk produced by taps with kw//s >= 1 must land only in halo columns.
    assert Wq > Wo, "flat-row conv2 layout requires halo columns (Wq > Wo)"

    # Phase decomposition: for s == 1 the transpose below is an identity that
    # XLA removes, so this is just the halo pad; real data movement only for
    # strided blocks.
    # TODO(synk): fold this pad (and the s>1 phase transpose) into conv1's
    # out_specs to save a y1-sized HBM round trip.
    # TODO(synk): rolling 3-slab depth window (manual DMA) would cut the 3x
    # re-read of depth slabs across the kd grid axis.
    z = yp.reshape(N, D + 2, Hq, s, Wq, s, Cp).transpose(0, 1, 3, 5, 2, 4, 6)
    z = z.reshape(N * (D + 2), s * s, Hq * Wq, Cp)

    Mrow = Ho * Wq                       # rows per output plane (incl. halo cols)
    Mrow_p = _round_up(Mrow, 8)
    max_off = (2 // s) * Wq + (2 // s)
    flat_need = max_off + Mrow_p
    if flat_need > Hq * Wq:
        z = jnp.pad(z, ((0, 0), (0, 0), (0, flat_need - Hq * Wq), (0, 0)))
    flat_len = z.shape[2]

    # TODO(synk): tile Mrow for very large H*W / Pp so the per-step VMEM stays
    # bounded on v7x (64 MiB VMEM per TensorCore).
    kernel = functools.partial(_conv2_kernel, s=s, Wq=Wq, Mrow_p=Mrow_p)
    out = pl.pallas_call(
        kernel,
        out_shape=jax.ShapeDtypeStruct((N, D, Mrow_p, Pp), jnp.bfloat16),
        grid_spec=pltpu.PrefetchScalarGridSpec(
            num_scalar_prefetch=0,
            grid=(N, D, 3),
            in_specs=[
                pl.BlockSpec((1, s * s, flat_len, Cp),
                             lambda n, d, kd: (n * (D + 2) + d + kd, 0, 0, 0)),
                # 27-tap weights: constant block index => fetched once and kept
                # resident in VMEM (no per-step weight DMA).
                pl.BlockSpec((27, Cp, Pp), lambda n, d, kd: (0, 0, 0)),
                pl.BlockSpec((1, Pp), lambda n, d, kd: (0, 0)),
                pl.BlockSpec((1, Pp), lambda n, d, kd: (0, 0)),
            ],
            out_specs=pl.BlockSpec((1, 1, Mrow_p, Pp),
                                   lambda n, d, kd: (n, d, 0, 0)),
            scratch_shapes=[pltpu.VMEM((Mrow_p, Pp), jnp.float32)],
        ),
        compiler_params=_compiler_params(("parallel", "parallel", "arbitrary")),
    )(z, w2, scale.reshape(1, -1), shift.reshape(1, -1))
    return out, (Ho, Wo, Wq, Mrow, Mrow_p)


def conv3_bn_residual_relu(y2, w3, s3, b3, res, ws=None, ss=None, bs=None):
    """relu((y2@w3)*s3+b3 + shortcut); shortcut is a fused projection or residual.

    Output is bf16 to halve the HBM write of the block's largest tensor.
    """
    M, Pp = y2.shape
    Ep = w3.shape[1]
    tm = _pick_row_tile(M)
    Mp = _round_up(M, tm)
    if Mp != M:
        y2 = jnp.pad(y2, ((0, Mp - M), (0, 0)))
        res = jnp.pad(res, ((0, Mp - M), (0, 0)))
    Cr = res.shape[1]

    if ws is not None:
        kernel = _conv3_proj_kernel
        in_specs = [
            pl.BlockSpec((tm, Pp), lambda i: (i, 0)),
            pl.BlockSpec((Pp, Ep), lambda i: (0, 0)),
            pl.BlockSpec((1, Ep), lambda i: (0, 0)),
            pl.BlockSpec((1, Ep), lambda i: (0, 0)),
            pl.BlockSpec((tm, Cr), lambda i: (i, 0)),
            pl.BlockSpec((Cr, Ep), lambda i: (0, 0)),
            pl.BlockSpec((1, Ep), lambda i: (0, 0)),
            pl.BlockSpec((1, Ep), lambda i: (0, 0)),
        ]
        args = (y2, w3, s3.reshape(1, -1), b3.reshape(1, -1),
                res, ws, ss.reshape(1, -1), bs.reshape(1, -1))
    else:
        kernel = _conv3_id_kernel
        in_specs = [
            pl.BlockSpec((tm, Pp), lambda i: (i, 0)),
            pl.BlockSpec((Pp, Ep), lambda i: (0, 0)),
            pl.BlockSpec((1, Ep), lambda i: (0, 0)),
            pl.BlockSpec((1, Ep), lambda i: (0, 0)),
            pl.BlockSpec((tm, Cr), lambda i: (i, 0)),
        ]
        args = (y2, w3, s3.reshape(1, -1), b3.reshape(1, -1), res)

    out = pl.pallas_call(
        kernel,
        out_shape=jax.ShapeDtypeStruct((Mp, Ep), jnp.bfloat16),
        grid_spec=pltpu.PrefetchScalarGridSpec(
            num_scalar_prefetch=0,
            grid=(Mp // tm,),
            in_specs=in_specs,
            out_specs=pl.BlockSpec((tm, Ep), lambda i: (i, 0)),
        ),
        compiler_params=_compiler_params(("parallel",)),
    )(*args)
    return out[:M] if Mp != M else out


# ------------------------------- JAX glue -----------------------------------

def _pad_vec(v, n):
    return jnp.pad(v.astype(jnp.float32), (0, n - v.shape[0]))


def _pad_mat(m, r, c):
    return jnp.pad(m, ((0, r - m.shape[0]), (0, c - m.shape[1])))


def bottleneck3d_forward(x_ncdhw, p, stride):
    """Pallas implementation of Bottleneck3d.forward (eval-mode BN)."""
    bf = jnp.bfloat16
    x = jnp.transpose(x_ncdhw, (0, 2, 3, 4, 1))            # NCDHW -> NDHWC
    N, D, H, W, Cin = x.shape
    planes = p['w1'].shape[0]
    exp_planes = p['w3'].shape[0]
    Cp = _round_up(Cin, LANE)
    Pp = _round_up(planes, LANE)
    Ep = _round_up(exp_planes, LANE)

    xp = jnp.pad(x, ((0, 0),) * 4 + ((0, Cp - Cin),)).astype(bf)

    # conv1 (1x1x1) + bn1 + relu
    w1 = _pad_mat(p['w1'].reshape(planes, Cin).T, Cp, Pp).astype(bf)
    y1 = matmul_bn_relu(xp.reshape(-1, Cp), w1,
                        _pad_vec(p['s1'], Pp), _pad_vec(p['b1'], Pp), bf)
    y1 = y1.reshape(N, D, H, W, Pp)

    # conv2 (3x3x3, stride (1,s,s), pad 1) + bn2 + relu
    w2 = jnp.transpose(p['w2'], (2, 3, 4, 1, 0))           # (3,3,3,I,O)
    w2 = jnp.pad(w2, ((0, 0),) * 3 + ((0, Pp - planes), (0, Pp - planes)))
    w2 = w2.reshape(27, Pp, Pp).astype(bf)
    y2, (Ho, Wo, Wq, Mrow, Mrow_p) = conv2_3x3x3_bn_relu(
        y1, w2, _pad_vec(p['s2'], Pp), _pad_vec(p['b2'], Pp), stride)

    # shortcut source (bf16, reuses the channel-padded input): strided slice +
    # pads onto the same (Ho, Wq)-padded row grid as the conv2 output.
    # TODO(synk): read x directly inside the conv3 kernel via a strided
    # BlockSpec instead of materializing xs in HBM.
    use_proj = (stride != 1) or (Cin != exp_planes)
    xs = xp[:, :, ::stride, ::stride, :]                    # (N, D, Ho, Wo, Cp)
    xs = jnp.pad(xs, ((0, 0), (0, 0), (0, 0), (0, Wq - Wo), (0, 0)))
    xs = xs.reshape(N, D, Ho * Wq, Cp)
    xs = jnp.pad(xs, ((0, 0), (0, 0), (0, Mrow_p - Mrow), (0, 0)))
    xs = xs.reshape(N * D * Mrow_p, Cp)                     # bf16 residual

    # conv3 (1x1x1) + bn3 + shortcut (+ projection) + relu, all in one kernel
    w3 = _pad_mat(p['w3'].reshape(exp_planes, planes).T, Pp, Ep).astype(bf)
    y2f = y2.reshape(N * D * Mrow_p, Pp)
    if use_proj:
        ws = _pad_mat(p['ws'].reshape(exp_planes, Cin).T, Cp, Ep).astype(bf)
        out = conv3_bn_residual_relu(
            y2f, w3, _pad_vec(p['s3'], Ep), _pad_vec(p['b3'], Ep),
            xs, ws, _pad_vec(p['ss'], Ep), _pad_vec(p['bs'], Ep))
    else:
        # identity path: Cin == exp_planes, so Cp == Ep and xs aligns with out.
        out = conv3_bn_residual_relu(
            y2f, w3, _pad_vec(p['s3'], Ep), _pad_vec(p['b3'], Ep), xs)

    out = out.reshape(N, D, Mrow_p, Ep)[:, :, :Mrow, :exp_planes]
    out = out.reshape(N, D, Ho, Wq, exp_planes)[:, :, :, :Wo, :]
    return jnp.transpose(out, (0, 4, 1, 2, 3)).astype(jnp.float32)  # NCDHW f32


# --------------------------- reference (pure JAX) ----------------------------

def reference_forward(x, p, stride):
    """Same math via XLA convs (bf16 operands, f32 accumulation, folded BN)."""
    bf = jnp.bfloat16

    def conv3d(lhs, w, s, pad):
        return jax.lax.conv_general_dilated(
            lhs.astype(bf), w.astype(bf),
            window_strides=(1, s, s), padding=[(pad, pad)] * 3,
            dimension_numbers=('NCDHW', 'OIDHW', 'NCDHW'),
            preferred_element_type=jnp.float32)

    def bn(t, sc, sh):
        return t * sc[None, :, None, None, None] + sh[None, :, None, None, None]

    out = jax.nn.relu(bn(conv3d(x, p['w1'], 1, 0), p['s1'], p['b1']))
    out = jax.nn.relu(bn(conv3d(out, p['w2'], stride, 1), p['s2'], p['b2']))
    out = bn(conv3d(out, p['w3'], 1, 0), p['s3'], p['b3'])
    if 'ws' in p:
        sc = bn(conv3d(x, p['ws'], stride, 0), p['ss'], p['bs'])
    else:
        sc = x
    return jax.nn.relu(out + sc)


# ------------------------------ param init -----------------------------------

def init_params(key, in_planes, planes, stride):
    exp = 4 * planes
    ks = list(jax.random.split(key, 20))

    def w(k, shape):
        return 0.1 * jax.random.normal(k, shape, jnp.float32)

    def bn_fold(kg, kb, km, kv, c, eps=1e-5):
        gamma = 0.5 + jax.random.uniform(kg, (c,), jnp.float32)
        beta = 0.1 * jax.random.normal(kb, (c,), jnp.float32)
        mean = 0.1 * jax.random.normal(km, (c,), jnp.float32)
        var = 0.5 + jax.random.uniform(kv, (c,), jnp.float32)
        scale = gamma / jnp.sqrt(var + eps)
        shift = beta - mean * scale
        return scale, shift

    p = {}
    p['w1'] = w(ks[0], (planes, in_planes, 1, 1, 1))
    p['s1'], p['b1'] = bn_fold(ks[1], ks[2], ks[3], ks[4], planes)
    p['w2'] = w(ks[5], (planes, planes, 3, 3, 3))
    p['s2'], p['b2'] = bn_fold(ks[6], ks[7], ks[8], ks[9], planes)
    p['w3'] = w(ks[10], (exp, planes, 1, 1, 1))
    p['s3'], p['b3'] = bn_fold(ks[11], ks[12], ks[13], ks[14], exp)
    if stride != 1 or in_planes != exp:
        p['ws'] = w(ks[15], (exp, in_planes, 1, 1, 1))
        p['ss'], p['bs'] = bn_fold(ks[16], ks[17], ks[18], ks[19], exp)
    return p


# --------------------------------- main --------------------------------------

if __name__ == "__main__":
    fwd = jax.jit(bottleneck3d_forward, static_argnums=(2,))
    ref_fwd = jax.jit(reference_forward, static_argnums=(2,))

    key = jax.random.PRNGKey(0)

    configs = [
        # (N, Cin, D, H, W, planes, stride)
        (2, 16, 4, 8, 8, 8, 2),   # projection shortcut (stride 2)
        (2, 32, 4, 8, 8, 8, 1),   # identity shortcut (stride 1, Cin == 4*planes)
    ]
    for (N, Cin, D, H, W, planes, stride) in configs:
        kx, kp, key = jax.random.split(key, 3)
        x = jax.random.normal(kx, (N, Cin, D, H, W), jnp.float32)
        params = init_params(kp, Cin, planes, stride)

        out = jax.block_until_ready(fwd(x, params, stride))
        ref = jax.block_until_ready(ref_fwd(x, params, stride))

        Ho = (H - 1) // stride + 1
        Wo = (W - 1) // stride + 1
        assert out.shape == (N, 4 * planes, D, Ho, Wo), out.shape
        err = float(jnp.max(jnp.abs(out - ref)))
        # tolerance reflects bf16 activations / bf16 residual / bf16 final store
        assert jnp.allclose(out, ref, atol=4e-2, rtol=4e-2), err

    print("KERNEL_OK")
</pallas_src>

<mosaic_0001>
module attributes {stable_mosaic.version = 11 : i64} {
  func.func @_mm_bn_relu_kernel(%arg0: i32, %arg1: memref<512x128xbf16, #tpu.memory_space<vmem>>, %arg2: memref<128x128xbf16, #tpu.memory_space<vmem>>, %arg3: memref<1x128xf32, #tpu.memory_space<vmem>>, %arg4: memref<1x128xf32, #tpu.memory_space<vmem>>, %arg5: memref<512x128xbf16, #tpu.memory_space<vmem>>) attributes {dimension_semantics = [#tpu.dimension_semantics<parallel>], iteration_bounds = array<i64: 1>, scalar_prefetch = 0 : i64, scratch_operands = 0 : i64, tpu.core_type = #tpu.core_type<tc>, window_params = [{transform_indices = @transform_0, window_bounds = array<i64: 512, 128>}, {pipeline_mode = #tpu.pipeline_mode<synchronous>, transform_indices = @transform_1, window_bounds = array<i64: 128, 128>}, {pipeline_mode = #tpu.pipeline_mode<synchronous>, transform_indices = @transform_2, window_bounds = array<i64: 1, 128>}, {pipeline_mode = #tpu.pipeline_mode<synchronous>, transform_indices = @transform_3, window_bounds = array<i64: 1, 128>}, {transform_indices = @transform_4, window_bounds = array<i64: 512, 128>}]} {
    %c0 = arith.constant 0 : index
    %c0_0 = arith.constant 0 : index
    %0 = vector.load %arg1[%c0, %c0_0] : memref<512x128xbf16, #tpu.memory_space<vmem>>, vector<512x128xbf16>
    %c0_1 = arith.constant 0 : index
    %c0_2 = arith.constant 0 : index
    %1 = vector.load %arg2[%c0_1, %c0_2] : memref<128x128xbf16, #tpu.memory_space<vmem>>, vector<128x128xbf16>
    %cst = arith.constant dense<0.000000e+00> : vector<512x128xf32>
    %2 = tpu.matmul %0, %1, %cst {dimension_numbers = #tpu.dot_dimension_numbers<[1], [0], [0], [1], [0, 0, 1, 1], [], []>} : vector<512x128xbf16>, vector<128x128xbf16>, vector<512x128xf32> -> vector<512x128xf32>
    %c0_3 = arith.constant 0 : index
    %c0_4 = arith.constant 0 : index
    %3 = vector.load %arg3[%c0_3, %c0_4] : memref<1x128xf32, #tpu.memory_space<vmem>>, vector<1x128xf32>
    %4 = vector.broadcast %3 : vector<1x128xf32> to vector<512x128xf32>
    %5 = arith.mulf %2, %4 : vector<512x128xf32>
    %c0_5 = arith.constant 0 : index
    %c0_6 = arith.constant 0 : index
    %6 = vector.load %arg4[%c0_5, %c0_6] : memref<1x128xf32, #tpu.memory_space<vmem>>, vector<1x128xf32>
    %7 = vector.broadcast %6 : vector<1x128xf32> to vector<512x128xf32>
    %8 = arith.addf %5, %7 : vector<512x128xf32>
    %cst_7 = arith.constant 0.000000e+00 : f32
    %9 = vector.broadcast %cst_7 : f32 to vector<512x128xf32>
    %10 = arith.maximumf %8, %9 : vector<512x128xf32>
    %11 = arith.truncf %10 : vector<512x128xf32> to vector<512x128xbf16>
    %c0_8 = arith.constant 0 : index
    %c0_9 = arith.constant 0 : index
    %12 = vector.load %arg5[%c0_8, %c0_9] : memref<512x128xbf16, #tpu.memory_space<vmem>>, vector<512x128xbf16>
    tpu.vector_store %arg5[%c0_8, %c0_9], %11 {strides = array<i32>} : memref<512x128xbf16, #tpu.memory_space<vmem>>, vector<512x128xbf16>,
    return
  }
  func.func @transform_0(%arg0: i32) -> (i32, i32) {
    %c0_i32 = arith.constant 0 : i32
    %c0_i32_0 = arith.constant 0 : i32
    return %arg0, %c0_i32 : i32, i32
  }
  func.func @transform_1(%arg0: i32) -> (i32, i32) {
    %c0_i32 = arith.constant 0 : i32
    %c0_i32_0 = arith.constant 0 : i32
    %c0_i32_1 = arith.constant 0 : i32
    return %c0_i32, %c0_i32_0 : i32, i32
  }
  func.func @transform_2(%arg0: i32) -> (i32, i32) {
    %c0_i32 = arith.constant 0 : i32
    %c0_i32_0 = arith.constant 0 : i32
    %c0_i32_1 = arith.constant 0 : i32
    return %c0_i32, %c0_i32_0 : i32, i32
  }
  func.func @transform_3(%arg0: i32) -> (i32, i32) {
    %c0_i32 = arith.constant 0 : i32
    %c0_i32_0 = arith.constant 0 : i32
    %c0_i32_1 = arith.constant 0 : i32
    return %c0_i32, %c0_i32_0 : i32, i32
  }
  func.func @transform_4(%arg0: i32) -> (i32, i32) {
    %c0_i32 = arith.constant 0 : i32
    %c0_i32_0 = arith.constant 0 : i32
    return %arg0, %c0_i32 : i32, i32
  }
}

module attributes {stable_mosaic.version = 11 : i64} {
  func.func @_conv2_kernel(%arg0: i32, %arg1: i32, %arg2: i32, %arg3: memref<1x4x30x128xbf16, #tpu.memory_space<vmem>>, %arg4: memref<27x128x128xbf16, #tpu.memory_space<vmem>>, %arg5: memref<1x128xf32, #tpu.memory_space<vmem>>, %arg6: memref<1x128xf32, #tpu.memory_space<vmem>>, %arg7: memref<1x1x24x128xbf16, #tpu.memory_space<vmem>>, %arg8: memref<24x128xf32, #tpu.memory_space<vmem>>) attributes {dimension_semantics = [#tpu.dimension_semantics<parallel>, #tpu.dimension_semantics<parallel>, #tpu.dimension_semantics<arbitrary>], iteration_bounds = array<i64: 2, 4, 3>, scalar_prefetch = 0 : i64, scratch_operands = 1 : i64, tpu.core_type = #tpu.core_type<tc>, window_params = [{transform_indices = @transform_0, window_bounds = array<i64: 1, 4, 30, 128>}, {pipeline_mode = #tpu.pipeline_mode<synchronous>, transform_indices = @transform_1, window_bounds = array<i64: 27, 128, 128>}, {pipeline_mode = #tpu.pipeline_mode<synchronous>, transform_indices = @transform_2, window_bounds = array<i64: 1, 128>}, {pipeline_mode = #tpu.pipeline_mode<synchronous>, transform_indices = @transform_3, window_bounds = array<i64: 1, 128>}, {transform_indices = @transform_4, window_bounds = array<i64: 1, 1, 24, 128>}]} {
    %c0_i32 = arith.constant 0 : i32
    %0 = arith.cmpi eq, %arg2, %c0_i32 : i32
    %1 = arith.extui %0 : i1 to i32
    %c0_i32_0 = arith.constant 0 : i32
    %2 = arith.cmpi ne, %1, %c0_i32_0 : i32
    scf.if %2 {
      %cst_117 = arith.constant 0.000000e+00 : f32
      %114 = vector.broadcast %cst_117 : f32 to vector<24x128xf32>
      %c0_118 = arith.constant 0 : index
      %c0_119 = arith.constant 0 : index
      %115 = vector.load %arg8[%c0_118, %c0_119] : memref<24x128xf32, #tpu.memory_space<vmem>>, vector<24x128xf32>
      tpu.vector_store %arg8[%c0_118, %c0_119], %114 {strides = array<i32>} : memref<24x128xf32, #tpu.memory_space<vmem>>, vector<24x128xf32>,
    } else {
    }
    %c0 = arith.constant 0 : index
    %c0_1 = arith.constant 0 : index
    %c0_2 = arith.constant 0 : index
    %c0_3 = arith.constant 0 : index
    %3 = vector.load %arg3[%c0, %c0_1, %c0_2, %c0_3] : memref<1x4x30x128xbf16, #tpu.memory_space<vmem>>, vector<1x1x24x128xbf16>
    %4 = vector.shape_cast %3 : vector<1x1x24x128xbf16> to vector<24x128xbf16>
    %c9_i32 = arith.constant 9 : i32
    %5 = arith.muli %arg2, %c9_i32 : i32
    %c0_i32_4 = arith.constant 0 : i32
    %6 = arith.addi %5, %c0_i32_4 : i32
    %c0_i32_5 = arith.constant 0 : i32
    %7 = arith.addi %6, %c0_i32_5 : i32
    %8 = arith.index_cast %7 : i32 to index
    %c0_6 = arith.constant 0 : index
    %c0_7 = arith.constant 0 : index
    %9 = vector.load %arg4[%8, %c0_6, %c0_7] : memref<27x128x128xbf16, #tpu.memory_space<vmem>>, vector<1x128x128xbf16>
    %10 = vector.shape_cast %9 : vector<1x128x128xbf16> to vector<128x128xbf16>
    %c0_8 = arith.constant 0 : index
    %c0_9 = arith.constant 0 : index
    %11 = vector.load %arg8[%c0_8, %c0_9] : memref<24x128xf32, #tpu.memory_space<vmem>>, vector<24x128xf32>
    %cst = arith.constant dense<0.000000e+00> : vector<24x128xf32>
    %12 = tpu.matmul %4, %10, %cst {dimension_numbers = #tpu.dot_dimension_numbers<[1], [0], [0], [1], [0, 0, 1, 1], [], []>} : vector<24x128xbf16>, vector<128x128xbf16>, vector<24x128xf32> -> vector<24x128xf32>
    %13 = arith.addf %11, %12 : vector<24x128xf32>
    %c0_10 = arith.constant 0 : index
    %c0_11 = arith.constant 0 : index
    %14 = vector.load %arg8[%c0_10, %c0_11] : memref<24x128xf32, #tpu.memory_space<vmem>>, vector<24x128xf32>
    tpu.vector_store %arg8[%c0_10, %c0_11], %13 {strides = array<i32>} : memref<24x128xf32, #tpu.memory_space<vmem>>, vector<24x128xf32>,
    %c0_12 = arith.constant 0 : index
    %c1 = arith.constant 1 : index
    %c0_13 = arith.constant 0 : index
    %c0_14 = arith.constant 0 : index
    %15 = vector.load %arg3[%c0_12, %c1, %c0_13, %c0_14] : memref<1x4x30x128xbf16, #tpu.memory_space<vmem>>, vector<1x1x24x128xbf16>
    %16 = vector.shape_cast %15 : vector<1x1x24x128xbf16> to vector<24x128xbf16>
    %c9_i32_15 = arith.constant 9 : i32
    %17 = arith.muli %arg2, %c9_i32_15 : i32
    %c0_i32_16 = arith.constant 0 : i32
    %18 = arith.addi %17, %c0_i32_16 : i32
    %c1_i32 = arith.constant 1 : i32
    %19 = arith.addi %18, %c1_i32 : i32
    %20 = arith.index_cast %19 : i32 to index
    %c0_17 = arith.constant 0 : index
    %c0_18 = arith.constant 0 : index
    %21 = vector.load %arg4[%20, %c0_17, %c0_18] : memref<27x128x128xbf16, #tpu.memory_space<vmem>>, vector<1x128x128xbf16>
    %22 = vector.shape_cast %21 : vector<1x128x128xbf16> to vector<128x128xbf16>
    %c0_19 = arith.constant 0 : index
    %c0_20 = arith.constant 0 : index
    %23 = vector.load %arg8[%c0_19, %c0_20] : memref<24x128xf32, #tpu.memory_space<vmem>>, vector<24x128xf32>
    %cst_21 = arith.constant dense<0.000000e+00> : vector<24x128xf32>
    %24 = tpu.matmul %16, %22, %cst_21 {dimension_numbers = #tpu.dot_dimension_numbers<[1], [0], [0], [1], [0, 0, 1, 1], [], []>} : vector<24x128xbf16>, vector<128x128xbf16>, vector<24x128xf32> -> vector<24x128xf32>
    %25 = arith.addf %23, %24 : vector<24x128xf32>
    %c0_22 = arith.constant 0 : index
    %c0_23 = arith.constant 0 : index
    %26 = vector.load %arg8[%c0_22, %c0_23] : memref<24x128xf32, #tpu.memory_space<vmem>>, vector<24x128xf32>
    tpu.vector_store %arg8[%c0_22, %c0_23], %25 {strides = array<i32>} : memref<24x128xf32, #tpu.memory_space<vmem>>, vector<24x128xf32>,
    %c0_24 = arith.constant 0 : index
    %c0_25 = arith.constant 0 : index
    %c1_26 = arith.constant 1 : index
    %c0_27 = arith.constant 0 : index
    %27 = vector.load %arg3[%c0_24, %c0_25, %c1_26, %c0_27] : memref<1x4x30x128xbf16, #tpu.memory_space<vmem>>, vector<1x1x24x128xbf16>
    %28 = vector.shape_cast %27 : vector<1x1x24x128xbf16> to vector<24x128xbf16>
    %c9_i32_28 = arith.constant 9 : i32
    %29 = arith.muli %arg2, %c9_i32_28 : i32
    %c0_i32_29 = arith.constant 0 : i32
    %30 = arith.addi %29, %c0_i32_29 : i32
    %c2_i32 = arith.constant 2 : i32
    %31 = arith.addi %30, %c2_i32 : i32
    %32 = arith.index_cast %31 : i32 to index
    %c0_30 = arith.constant 0 : index
    %c0_31 = arith.constant 0 : index
    %33 = vector.load %arg4[%32, %c0_30, %c0_31] : memref<27x128x128xbf16, #tpu.memory_space<vmem>>, vector<1x128x128xbf16>
    %34 = vector.shape_cast %33 : vector<1x128x128xbf16> to vector<128x128xbf16>
    %c0_32 = arith.constant 0 : index
    %c0_33 = arith.constant 0 : index
    %35 = vector.load %arg8[%c0_32, %c0_33] : memref<24x128xf32, #tpu.memory_space<vmem>>, vector<24x128xf32>
    %cst_34 = arith.constant dense<0.000000e+00> : vector<24x128xf32>
    %36 = tpu.matmul %28, %34, %cst_34 {dimension_numbers = #tpu.dot_dimension_numbers<[1], [0], [0], [1], [0, 0, 1, 1], [], []>} : vector<24x128xbf16>, vector<128x128xbf16>, vector<24x128xf32> -> vector<24x128xf32>
    %37 = arith.addf %35, %36 : vector<24x128xf32>
    %c0_35 = arith.constant 0 : index
    %c0_36 = arith.constant 0 : index
    %38 = vector.load %arg8[%c0_35, %c0_36] : memref<24x128xf32, #tpu.memory_space<vmem>>, vector<24x128xf32>
    tpu.vector_store %arg8[%c0_35, %c0_36], %37 {strides = array<i32>} : memref<24x128xf32, #tpu.memory_space<vmem>>, vector<24x128xf32>,
    %c0_37 = arith.constant 0 : index
    %c2 = arith.constant 2 : index
    %c0_38 = arith.constant 0 : index
    %c0_39 = arith.constant 0 : index
    %39 = vector.load %arg3[%c0_37, %c2, %c0_38, %c0_39] : memref<1x4x30x128xbf16, #tpu.memory_space<vmem>>, vector<1x1x24x128xbf16>
    %40 = vector.shape_cast %39 : vector<1x1x24x128xbf16> to vector<24x128xbf16>
    %c9_i32_40 = arith.constant 9 : i32
    %41 = arith.muli %arg2, %c9_i32_40 : i32
    %c3_i32 = arith.constant 3 : i32
    %42 = arith.addi %41, %c3_i32 : i32
    %c0_i32_41 = arith.constant 0 : i32
    %43 = arith.addi %42, %c0_i32_41 : i32
    %44 = arith.index_cast %43 : i32 to index
    %c0_42 = arith.constant 0 : index
    %c0_43 = arith.constant 0 : index
    %45 = vector.load %arg4[%44, %c0_42, %c0_43] : memref<27x128x128xbf16, #tpu.memory_space<vmem>>, vector<1x128x128xbf16>
    %46 = vector.shape_cast %45 : vector<1x128x128xbf16> to vector<128x128xbf16>
    %c0_44 = arith.constant 0 : index
    %c0_45 = arith.constant 0 : index
    %47 = vector.load %arg8[%c0_44, %c0_45] : memref<24x128xf32, #tpu.memory_space<vmem>>, vector<24x128xf32>
    %cst_46 = arith.constant dense<0.000000e+00> : vector<24x128xf32>
    %48 = tpu.matmul %40, %46, %cst_46 {dimension_numbers = #tpu.dot_dimension_numbers<[1], [0], [0], [1], [0, 0, 1, 1], [], []>} : vector<24x128xbf16>, vector<128x128xbf16>, vector<24x128xf32> -> vector<24x128xf32>
    %49 = arith.addf %47, %48 : vector<24x128xf32>
    %c0_47 = arith.constant 0 : index
    %c0_48 = arith.constant 0 : index
    %50 = vector.load %arg8[%c0_47, %c0_48] : memref<24x128xf32, #tpu.memory_space<vmem>>, vector<24x128xf32>
    tpu.vector_store %arg8[%c0_47, %c0_48], %49 {strides = array<i32>} : memref<24x128xf32, #tpu.memory_space<vmem>>, vector<24x128xf32>,
    %c0_49 = arith.constant 0 : index
    %c3 = arith.constant 3 : index
    %c0_50 = arith.constant 0 : index
    %c0_51 = arith.constant 0 : index
    %51 = vector.load %arg3[%c0_49, %c3, %c0_50, %c0_51] : memref<1x4x30x128xbf16, #tpu.memory_space<vmem>>, vector<1x1x24x128xbf16>
    %52 = vector.shape_cast %51 : vector<1x1x24x128xbf16> to vector<24x128xbf16>
    %c9_i32_52 = arith.constant 9 : i32
    %53 = arith.muli %arg2, %c9_i32_52 : i32
    %c3_i32_53 = arith.constant 3 : i32
    %54 = arith.addi %53, %c3_i32_53 : i32
    %c1_i32_54 = arith.constant 1 : i32
    %55 = arith.addi %54, %c1_i32_54 : i32
    %56 = arith.index_cast %55 : i32 to index
    %c0_55 = arith.constant 0 : index
    %c0_56 = arith.constant 0 : index
    %57 = vector.load %arg4[%56, %c0_55, %c0_56] : memref<27x128x128xbf16, #tpu.memory_space<vmem>>, vector<1x128x128xbf16>
    %58 = vector.shape_cast %57 : vector<1x128x128xbf16> to vector<128x128xbf16>
    %c0_57 = arith.constant 0 : index
    %c0_58 = arith.constant 0 : index
    %59 = vector.load %arg8[%c0_57, %c0_58] : memref<24x128xf32, #tpu.memory_space<vmem>>, vector<24x128xf32>
    %cst_59 = arith.constant dense<0.000000e+00> : vector<24x128xf32>
    %60 = tpu.matmul %52, %58, %cst_59 {dimension_numbers = #tpu.dot_dimension_numbers<[1], [0], [0], [1], [0, 0, 1, 1], [], []>} : vector<24x128xbf16>, vector<128x128xbf16>, vector<24x128xf32> -> vector<24x128xf32>
    %61 = arith.addf %59, %60 : vector<24x128xf32>
    %c0_60 = arith.constant 0 : index
    %c0_61 = arith.constant 0 : index
    %62 = vector.load %arg8[%c0_60, %c0_61] : memref<24x128xf32, #tpu.memory_space<vmem>>, vector<24x128xf32>
    tpu.vector_store %arg8[%c0_60, %c0_61], %61 {strides = array<i32>} : memref<24x128xf32, #tpu.memory_space<vmem>>, vector<24x128xf32>,
    %c0_62 = arith.constant 0 : index
    %c2_63 = arith.constant 2 : index
    %c1_64 = arith.constant 1 : index
    %c0_65 = arith.constant 0 : index
    %63 = vector.load %arg3[%c0_62, %c2_63, %c1_64, %c0_65] : memref<1x4x30x128xbf16, #tpu.memory_space<vmem>>, vector<1x1x24x128xbf16>
    %64 = vector.shape_cast %63 : vector<1x1x24x128xbf16> to vector<24x128xbf16>
    %c9_i32_66 = arith.constant 9 : i32
    %65 = arith.muli %arg2, %c9_i32_66 : i32
    %c3_i32_67 = arith.constant 3 : i32
    %66 = arith.addi %65, %c3_i32_67 : i32
    %c2_i32_68 = arith.constant 2 : i32
    %67 = arith.addi %66, %c2_i32_68 : i32
    %68 = arith.index_cast %67 : i32 to index
    %c0_69 = arith.constant 0 : index
    %c0_70 = arith.constant 0 : index
    %69 = vector.load %arg4[%68, %c0_69, %c0_70] : memref<27x128x128xbf16, #tpu.memory_space<vmem>>, vector<1x128x128xbf16>
    %70 = vector.shape_cast %69 : vector<1x128x128xbf16> to vector<128x128xbf16>
    %c0_71 = arith.constant 0 : index
    %c0_72 = arith.constant 0 : index
    %71 = vector.load %arg8[%c0_71, %c0_72] : memref<24x128xf32, #tpu.memory_space<vmem>>, vector<24x128xf32>
    %cst_73 = arith.constant dense<0.000000e+00> : vector<24x128xf32>
    %72 = tpu.matmul %64, %70, %cst_73 {dimension_numbers = #tpu.dot_dimension_numbers<[1], [0], [0], [1], [0, 0, 1, 1], [], []>} : vector<24x128xbf16>, vector<128x128xbf16>, vector<24x128xf32> -> vector<24x128xf32>
    %73 = arith.addf %71, %72 : vector<24x128xf32>
    %c0_74 = arith.constant 0 : index
    %c0_75 = arith.constant 0 : index
    %74 = vector.load %arg8[%c0_74, %c0_75] : memref<24x128xf32, #tpu.memory_space<vmem>>, vector<24x128xf32>
    tpu.vector_store %arg8[%c0_74, %c0_75], %73 {strides = array<i32>} : memref<24x128xf32, #tpu.memory_space<vmem>>, vector<24x128xf32>,
    %c0_76 = arith.constant 0 : index
    %c0_77 = arith.constant 0 : index
    %c5 = arith.constant 5 : index
    %c0_78 = arith.constant 0 : index
    %75 = vector.load %arg3[%c0_76, %c0_77, %c5, %c0_78] : memref<1x4x30x128xbf16, #tpu.memory_space<vmem>>, vector<1x1x24x128xbf16>
    %76 = vector.shape_cast %75 : vector<1x1x24x128xbf16> to vector<24x128xbf16>
    %c9_i32_79 = arith.constant 9 : i32
    %77 = arith.muli %arg2, %c9_i32_79 : i32
    %c6_i32 = arith.constant 6 : i32
    %78 = arith.addi %77, %c6_i32 : i32
    %c0_i32_80 = arith.constant 0 : i32
    %79 = arith.addi %78, %c0_i32_80 : i32
    %80 = arith.index_cast %79 : i32 to index
    %c0_81 = arith.constant 0 : index
    %c0_82 = arith.constant 0 : index
    %81 = vector.load %arg4[%80, %c0_81, %c0_82] : memref<27x128x128xbf16, #tpu.memory_space<vmem>>, vector<1x128x128xbf16>
    %82 = vector.shape_cast %81 : vector<1x128x128xbf16> to vector<128x128xbf16>
    %c0_83 = arith.constant 0 : index
    %c0_84 = arith.constant 0 : index
    %83 = vector.load %arg8[%c0_83, %c0_84] : memref<24x128xf32, #tpu.memory_space<vmem>>, vector<24x128xf32>
    %cst_85 = arith.constant dense<0.000000e+00> : vector<24x128xf32>
    %84 = tpu.matmul %76, %82, %cst_85 {dimension_numbers = #tpu.dot_dimension_numbers<[1], [0], [0], [1], [0, 0, 1, 1], [], []>} : vector<24x128xbf16>, vector<128x128xbf16>, vector<24x128xf32> -> vector<24x128xf32>
    %85 = arith.addf %83, %84 : vector<24x128xf32>
    %c0_86 = arith.constant 0 : index
    %c0_87 = arith.constant 0 : index
    %86 = vector.load %arg8[%c0_86, %c0_87] : memref<24x128xf32, #tpu.memory_space<vmem>>, vector<24x128xf32>
    tpu.vector_store %arg8[%c0_86, %c0_87], %85 {strides = array<i32>} : memref<24x128xf32, #tpu.memory_space<vmem>>, vector<24x128xf32>,
    %c0_88 = arith.constant 0 : index
    %c1_89 = arith.constant 1 : index
    %c5_90 = arith.constant 5 : index
    %c0_91 = arith.constant 0 : index
    %87 = vector.load %arg3[%c0_88, %c1_89, %c5_90, %c0_91] : memref<1x4x30x128xbf16, #tpu.memory_space<vmem>>, vector<1x1x24x128xbf16>
    %88 = vector.shape_cast %87 : vector<1x1x24x128xbf16> to vector<24x128xbf16>
    %c9_i32_92 = arith.constant 9 : i32
    %89 = arith.muli %arg2, %c9_i32_92 : i32
    %c6_i32_93 = arith.constant 6 : i32
    %90 = arith.addi %89, %c6_i32_93 : i32
    %c1_i32_94 = arith.constant 1 : i32
    %91 = arith.addi %90, %c1_i32_94 : i32
    %92 = arith.index_cast %91 : i32 to index
    %c0_95 = arith.constant 0 : index
    %c0_96 = arith.constant 0 : index
    %93 = vector.load %arg4[%92, %c0_95, %c0_96] : memref<27x128x128xbf16, #tpu.memory_space<vmem>>, vector<1x128x128xbf16>
    %94 = vector.shape_cast %93 : vector<1x128x128xbf16> to vector<128x128xbf16>
    %c0_97 = arith.constant 0 : index
    %c0_98 = arith.constant 0 : index
    %95 = vector.load %arg8[%c0_97, %c0_98] : memref<24x128xf32, #tpu.memory_space<vmem>>, vector<24x128xf32>
    %cst_99 = arith.constant dense<0.000000e+00> : vector<24x128xf32>
    %96 = tpu.matmul %88, %94, %cst_99 {dimension_numbers = #tpu.dot_dimension_numbers<[1], [0], [0], [1], [0, 0, 1, 1], [], []>} : vector<24x128xbf16>, vector<128x128xbf16>, vector<24x128xf32> -> vector<24x128xf32>
    %97 = arith.addf %95, %96 : vector<24x128xf32>
    %c0_100 = arith.constant 0 : index
    %c0_101 = arith.constant 0 : index
    %98 = vector.load %arg8[%c0_100, %c0_101] : memref<24x128xf32, #tpu.memory_space<vmem>>, vector<24x128xf32>
    tpu.vector_store %arg8[%c0_100, %c0_101], %97 {strides = array<i32>} : memref<24x128xf32, #tpu.memory_space<vmem>>, vector<24x128xf32>,
    %c0_102 = arith.constant 0 : index
    %c0_103 = arith.constant 0 : index
    %c6 = arith.constant 6 : index
    %c0_104 = arith.constant 0 : index
    %99 = vector.load %arg3[%c0_102, %c0_103, %c6, %c0_104] : memref<1x4x30x128xbf16, #tpu.memory_space<vmem>>, vector<1x1x24x128xbf16>
    %100 = vector.shape_cast %99 : vector<1x1x24x128xbf16> to vector<24x128xbf16>
    %c9_i32_105 = arith.constant 9 : i32
    %101 = arith.muli %arg2, %c9_i32_105 : i32
    %c6_i32_106 = arith.constant 6 : i32
    %102 = arith.addi %101, %c6_i32_106 : i32
    %c2_i32_107 = arith.constant 2 : i32
    %103 = arith.addi %102, %c2_i32_107 : i32
    %104 = arith.index_cast %103 : i32 to index
    %c0_108 = arith.constant 0 : index
    %c0_109 = arith.constant 0 : index
    %105 = vector.load %arg4[%104, %c0_108, %c0_109] : memref<27x128x128xbf16, #tpu.memory_space<vmem>>, vector<1x128x128xbf16>
    %106 = vector.shape_cast %105 : vector<1x128x128xbf16> to vector<128x128xbf16>
    %c0_110 = arith.constant 0 : index
    %c0_111 = arith.constant 0 : index
    %107 = vector.load %arg8[%c0_110, %c0_111] : memref<24x128xf32, #tpu.memory_space<vmem>>, vector<24x128xf32>
    %cst_112 = arith.constant dense<0.000000e+00> : vector<24x128xf32>
    %108 = tpu.matmul %100, %106, %cst_112 {dimension_numbers = #tpu.dot_dimension_numbers<[1], [0], [0], [1], [0, 0, 1, 1], [], []>} : vector<24x128xbf16>, vector<128x128xbf16>, vector<24x128xf32> -> vector<24x128xf32>
    %109 = arith.addf %107, %108 : vector<24x128xf32>
    %c0_113 = arith.constant 0 : index
    %c0_114 = arith.constant 0 : index
    %110 = vector.load %arg8[%c0_113, %c0_114] : memref<24x128xf32, #tpu.memory_space<vmem>>, vector<24x128xf32>
    tpu.vector_store %arg8[%c0_113, %c0_114], %109 {strides = array<i32>} : memref<24x128xf32, #tpu.memory_space<vmem>>, vector<24x128xf32>,
    %c2_i32_115 = arith.constant 2 : i32
    %111 = arith.cmpi eq, %arg2, %c2_i32_115 : i32
    %112 = arith.extui %111 : i1 to i32
    %c0_i32_116 = arith.constant 0 : i32
    %113 = arith.cmpi ne, %112, %c0_i32_116 : i32
    scf.if %113 {
      %c0_117 = arith.constant 0 : index
      %c0_118 = arith.constant 0 : index
      %114 = vector.load %arg8[%c0_117, %c0_118] : memref<24x128xf32, #tpu.memory_space<vmem>>, vector<24x128xf32>
      %c0_119 = arith.constant 0 : index
      %c0_120 = arith.constant 0 : index
      %115 = vector.load %arg5[%c0_119, %c0_120] : memref<1x128xf32, #tpu.memory_space<vmem>>, vector<1x128xf32>
      %116 = vector.broadcast %115 : vector<1x128xf32> to vector<24x128xf32>
      %117 = arith.mulf %114, %116 : vector<24x128xf32>
      %c0_121 = arith.constant 0 : index
      %c0_122 = arith.constant 0 : index
      %118 = vector.load %arg6[%c0_121, %c0_122] : memref<1x128xf32, #tpu.memory_space<vmem>>, vector<1x128xf32>
      %119 = vector.broadcast %118 : vector<1x128xf32> to vector<24x128xf32>
      %120 = arith.addf %117, %119 : vector<24x128xf32>
      %cst_123 = arith.constant 0.000000e+00 : f32
      %121 = vector.broadcast %cst_123 : f32 to vector<24x128xf32>
      %122 = arith.maximumf %120, %121 : vector<24x128xf32>
      %123 = arith.truncf %122 : vector<24x128xf32> to vector<24x128xbf16>
      %c0_124 = arith.constant 0 : index
      %c0_125 = arith.constant 0 : index
      %c0_126 = arith.constant 0 : index
      %c0_127 = arith.constant 0 : index
      %124 = vector.load %arg7[%c0_124, %c0_125, %c0_126, %c0_127] : memref<1x1x24x128xbf16, #tpu.memory_space<vmem>>, vector<1x1x24x128xbf16>
      %125 = vector.shape_cast %124 : vector<1x1x24x128xbf16> to vector<24x128xbf16>
      %126 = vector.shape_cast %123 : vector<24x128xbf16> to vector<1x1x24x128xbf16>
      tpu.vector_store %arg7[%c0_124, %c0_125, %c0_126, %c0_127], %126 {strides = array<i32>} : memref<1x1x24x128xbf16, #tpu.memory_space<vmem>>, vector<1x1x24x128xbf16>,
    } else {
    }
    return
  }
  func.func @transform_0(%arg0: i32, %arg1: i32, %arg2: i32) -> (i32, i32, i32, i32) {
    %c6_i32 = arith.constant 6 : i32
    %0 = arith.muli %arg0, %c6_i32 : i32
    %1 = arith.addi %0, %arg1 : i32
    %2 = arith.addi %1, %arg2 : i32
    %c0_i32 = arith.constant 0 : i32
    %c0_i32_0 = arith.constant 0 : i32
    %c0_i32_1 = arith.constant 0 : i32
    %c0_i32_2 = arith.constant 0 : i32
    return %2, %c0_i32, %c0_i32_0, %c0_i32_1 : i32, i32, i32, i32
  }
  func.func @transform_1(%arg0: i32, %arg1: i32, %arg2: i32) -> (i32, i32, i32) {
    %c0_i32 = arith.constant 0 : i32
    %c0_i32_0 = arith.constant 0 : i32
    %c0_i32_1 = arith.constant 0 : i32
    %c0_i32_2 = arith.constant 0 : i32
    return %c0_i32, %c0_i32_0, %c0_i32_1 : i32, i32, i32
  }
  func.func @transform_2(%arg0: i32, %arg1: i32, %arg2: i32) -> (i32, i32) {
    %c0_i32 = arith.constant 0 : i32
    %c0_i32_0 = arith.constant 0 : i32
    %c0_i32_1 = arith.constant 0 : i32
    return %c0_i32, %c0_i32_0 : i32, i32
  }
  func.func @transform_3(%arg0: i32, %arg1: i32, %arg2: i32) -> (i32, i32) {
    %c0_i32 = arith.constant 0 : i32
    %c0_i32_0 = arith.constant 0 : i32
    %c0_i32_1 = arith.constant 0 : i32
    return %c0_i32, %c0_i32_0 : i32, i32
  }
  func.func @transform_4(%arg0: i32, %arg1: i32, %arg2: i32) -> (i32, i32, i32, i32) {
    %c0_i32 = arith.constant 0 : i32
    %c0_i32_0 = arith.constant 0 : i32
    %c0_i32_1 = arith.constant 0 : i32
    return %arg0, %arg1, %c0_i32, %c0_i32_0 : i32, i32, i32, i32
  }
}

module attributes {stable_mosaic.version = 11 : i64} {
  func.func @_conv3_proj_kernel(%arg0: i32, %arg1: memref<192x128xbf16, #tpu.memory_space<vmem>>, %arg2: memref<128x128xbf16, #tpu.memory_space<vmem>>, %arg3: memref<1x128xf32, #tpu.memory_space<vmem>>, %arg4: memref<1x128xf32, #tpu.memory_space<vmem>>, %arg5: memref<192x128xbf16, #tpu.memory_space<vmem>>, %arg6: memref<128x128xbf16, #tpu.memory_space<vmem>>, %arg7: memref<1x128xf32, #tpu.memory_space<vmem>>, %arg8: memref<1x128xf32, #tpu.memory_space<vmem>>, %arg9: memref<192x128xbf16, #tpu.memory_space<vmem>>) attributes {dimension_semantics = [#tpu.dimension_semantics<parallel>], iteration_bounds = array<i64: 1>, scalar_prefetch = 0 : i64, scratch_operands = 0 : i64, tpu.core_type = #tpu.core_type<tc>, window_params = [{transform_indices = @transform_0, window_bounds = array<i64: 192, 128>}, {pipeline_mode = #tpu.pipeline_mode<synchronous>, transform_indices = @transform_1, window_bounds = array<i64: 128, 128>}, {pipeline_mode = #tpu.pipeline_mode<synchronous>, transform_indices = @transform_2, window_bounds = array<i64: 1, 128>}, {pipeline_mode = #tpu.pipeline_mode<synchronous>, transform_indices = @transform_3, window_bounds = array<i64: 1, 128>}, {transform_indices = @transform_4, window_bounds = array<i64: 192, 128>}, {pipeline_mode = #tpu.pipeline_mode<synchronous>, transform_indices = @transform_5, window_bounds = array<i64: 128, 128>}, {pipeline_mode = #tpu.pipeline_mode<synchronous>, transform_indices = @transform_6, window_bounds = array<i64: 1, 128>}, {pipeline_mode = #tpu.pipeline_mode<synchronous>, transform_indices = @transform_7, window_bounds = array<i64: 1, 128>}, {transform_indices = @transform_8, window_bounds = array<i64: 192, 128>}]} {
    %c0 = arith.constant 0 : index
    %c0_0 = arith.constant 0 : index
    %0 = vector.load %arg1[%c0, %c0_0] : memref<192x128xbf16, #tpu.memory_space<vmem>>, vector<192x128xbf16>
    %c0_1 = arith.constant 0 : index
    %c0_2 = arith.constant 0 : index
    %1 = vector.load %arg2[%c0_1, %c0_2] : memref<128x128xbf16, #tpu.memory_space<vmem>>, vector<128x128xbf16>
    %cst = arith.constant dense<0.000000e+00> : vector<192x128xf32>
    %2 = tpu.matmul %0, %1, %cst {dimension_numbers = #tpu.dot_dimension_numbers<[1], [0], [0], [1], [0, 0, 1, 1], [], []>} : vector<192x128xbf16>, vector<128x128xbf16>, vector<192x128xf32> -> vector<192x128xf32>
    %c0_3 = arith.constant 0 : index
    %c0_4 = arith.constant 0 : index
    %3 = vector.load %arg3[%c0_3, %c0_4] : memref<1x128xf32, #tpu.memory_space<vmem>>, vector<1x128xf32>
    %4 = vector.broadcast %3 : vector<1x128xf32> to vector<192x128xf32>
    %5 = arith.mulf %2, %4 : vector<192x128xf32>
    %c0_5 = arith.constant 0 : index
    %c0_6 = arith.constant 0 : index
    %6 = vector.load %arg4[%c0_5, %c0_6] : memref<1x128xf32, #tpu.memory_space<vmem>>, vector<1x128xf32>
    %7 = vector.broadcast %6 : vector<1x128xf32> to vector<192x128xf32>
    %8 = arith.addf %5, %7 : vector<192x128xf32>
    %c0_7 = arith.constant 0 : index
    %c0_8 = arith.constant 0 : index
    %9 = vector.load %arg5[%c0_7, %c0_8] : memref<192x128xbf16, #tpu.memory_space<vmem>>, vector<192x128xbf16>
    %c0_9 = arith.constant 0 : index
    %c0_10 = arith.constant 0 : index
    %10 = vector.load %arg6[%c0_9, %c0_10] : memref<128x128xbf16, #tpu.memory_space<vmem>>, vector<128x128xbf16>
    %cst_11 = arith.constant dense<0.000000e+00> : vector<192x128xf32>
    %11 = tpu.matmul %9, %10, %cst_11 {dimension_numbers = #tpu.dot_dimension_numbers<[1], [0], [0], [1], [0, 0, 1, 1], [], []>} : vector<192x128xbf16>, vector<128x128xbf16>, vector<192x128xf32> -> vector<192x128xf32>
    %c0_12 = arith.constant 0 : index
    %c0_13 = arith.constant 0 : index
    %12 = vector.load %arg7[%c0_12, %c0_13] : memref<1x128xf32, #tpu.memory_space<vmem>>, vector<1x128xf32>
    %13 = vector.broadcast %12 : vector<1x128xf32> to vector<192x128xf32>
    %14 = arith.mulf %11, %13 : vector<192x128xf32>
    %c0_14 = arith.constant 0 : index
    %c0_15 = arith.constant 0 : index
    %15 = vector.load %arg8[%c0_14, %c0_15] : memref<1x128xf32, #tpu.memory_space<vmem>>, vector<1x128xf32>
    %16 = vector.broadcast %15 : vector<1x128xf32> to vector<192x128xf32>
    %17 = arith.addf %14, %16 : vector<192x128xf32>
    %18 = arith.addf %8, %17 : vector<192x128xf32>
    %cst_16 = arith.constant 0.000000e+00 : f32
    %19 = vector.broadcast %cst_16 : f32 to vector<192x128xf32>
    %20 = arith.maximumf %18, %19 : vector<192x128xf32>
    %21 = arith.truncf %20 : vector<192x128xf32> to vector<192x128xbf16>
    %c0_17 = arith.constant 0 : index
    %c0_18 = arith.constant 0 : index
    %22 = vector.load %arg9[%c0_17, %c0_18] : memref<192x128xbf16, #tpu.memory_space<vmem>>, vector<192x128xbf16>
    tpu.vector_store %arg9[%c0_17, %c0_18], %21 {strides = array<i32>} : memref<192x128xbf16, #tpu.memory_space<vmem>>, vector<192x128xbf16>,
    return
  }
  func.func @transform_0(%arg0: i32) -> (i32, i32) {
    %c0_i32 = arith.constant 0 : i32
    %c0_i32_0 = arith.constant 0 : i32
    return %arg0, %c0_i32 : i32, i32
  }
  func.func @transform_1(%arg0: i32) -> (i32, i32) {
    %c0_i32 = arith.constant 0 : i32
    %c0_i32_0 = arith.constant 0 : i32
    %c0_i32_1 = arith.constant 0 : i32
    return %c0_i32, %c0_i32_0 : i32, i32
  }
  func.func @transform_2(%arg0: i32) -> (i32, i32) {
    %c0_i32 = arith.constant 0 : i32
    %c0_i32_0 = arith.constant 0 : i32
    %c0_i32_1 = arith.constant 0 : i32
    return %c0_i32, %c0_i32_0 : i32, i32
  }
  func.func @transform_3(%arg0: i32) -> (i32, i32) {
    %c0_i32 = arith.constant 0 : i32
    %c0_i32_0 = arith.constant 0 : i32
    %c0_i32_1 = arith.constant 0 : i32
    return %c0_i32, %c0_i32_0 : i32, i32
  }
  func.func @transform_4(%arg0: i32) -> (i32, i32) {
    %c0_i32 = arith.constant 0 : i32
    %c0_i32_0 = arith.constant 0 : i32
    return %arg0, %c0_i32 : i32, i32
  }
  func.func @transform_5(%arg0: i32) -> (i32, i32) {
    %c0_i32 = arith.constant 0 : i32
    %c0_i32_0 = arith.constant 0 : i32
    %c0_i32_1 = arith.constant 0 : i32
    return %c0_i32, %c0_i32_0 : i32, i32
  }
  func.func @transform_6(%arg0: i32) -> (i32, i32) {
    %c0_i32 = arith.constant 0 : i32
    %c0_i32_0 = arith.constant 0 : i32
    %c0_i32_1 = arith.constant 0 : i32
    return %c0_i32, %c0_i32_0 : i32, i32
  }
  func.func @transform_7(%arg0: i32) -> (i32, i32) {
    %c0_i32 = arith.constant 0 : i32
    %c0_i32_0 = arith.constant 0 : i32
    %c0_i32_1 = arith.constant 0 : i32
    return %c0_i32, %c0_i32_0 : i32, i32
  }
  func.func @transform_8(%arg0: i32) -> (i32, i32) {
    %c0_i32 = arith.constant 0 : i32
    %c0_i32_0 = arith.constant 0 : i32
    return %arg0, %c0_i32 : i32, i32
  }
}

</mosaic_0001>

<bundles_post_ra>
// kernel: bottleneck3d_forward.3
= control target key start
LH: loop header
LB: loop body
LE: loop exit
PB: predicated region body
PF: predicated region fallthrough
CT: control target
= control target key end

     0   :  { %s2073_s1 = inlined_call_operand.vmem [shape: bf16[128,128], index: 1, kind: input, shape index: {}]   ;;  %s2074_s0 = inlined_call_operand.vmem [shape: bf16[512,128], index: 0, kind: input, shape index: {}]   ;;  %s2075_s2 = inlined_call_operand.vmem [shape: f32[1,128], index: 2, kind: input, shape index: {}]   ;;  %s2076_s3 = inlined_call_operand.vmem [shape: f32[1,128], index: 3, kind: input, shape index: {}]   ;;  %s2077_s4 = inlined_call_operand.vmem [shape: bf16[512,128], index: 4, kind: output, shape index: {}]  }
   0x1   :  { %v1654_v0 = vld [vmem:[%s2073_s1 + $0x38] sm:$0xff]   ;;  %v1655_v1 = vld [vmem:[%s2073_s1 + $0x30] sm:$0xff]   ;;  %v1656_v2 = vld [vmem:[%s2073_s1 + $0x28] sm:$0xff]  }
   0x2   :  { %1558 = vmatprep.subr.bf16.mxu0 %v1654_v0  ;;  %1638 = vmatprep.subr.bf16.mxu1 %v1654_v0  ;;  %v1657_v3 = vld [vmem:[%s2073_s1 + $0x20] sm:$0xff]   ;;  %v1658_v6 = vld [vmem:[%s2073_s1 + $0x18] sm:$0xff]   ;;  %v1659_v7 = vld [vmem:[%s2073_s1 + $0x10] sm:$0xff]  }
   0x3   :  { %1559 = vmatpush3.bf16.msra.mxu0 %v1654_v0  ;;  %1646 = vmatpush3.bf16.msra.mxu1 %v1654_v0  ;;  %v1662_v4 = vld [vmem:[%s2074_s0] sm:$0xff]   ;;  %v1660_v8 = vld [vmem:[%s2073_s1 + $0x8] sm:$0xff]   ;;  %v1666_v12 = vld [vmem:[%s2074_s0 + $0x10] sm:$0xff]  }
   0x4   :  { %1560 = vmatprep.subr.bf16.mxu0 %v1655_v1  ;;  %1639 = vmatprep.subr.bf16.mxu1 %v1655_v1  ;;  %v1663_v5 = vld [vmem:[%s2074_s0 + $0x80] sm:$0xff]   ;;  %v1664_v10 = vld [vmem:[%s2074_s0 + $0x8] sm:$0xff]   ;;  %v1667_v13 = vld [vmem:[%s2074_s0 + $0x90] sm:$0xff]  }
   0x5   :  { %1574 = vmatprep.mubr.bf16.mxu0 %v1662_v4  ;;  %1606 = vmatprep.mubr.bf16.mxu1 %v1663_v5  ;;  %v1661_v9 = vld [vmem:[%s2073_s1] sm:$0xff]   ;;  %v1665_v11 = vld [vmem:[%s2074_s0 + $0x88] sm:$0xff]   ;;  %v1668_v14 = vld [vmem:[%s2074_s0 + $0x18] sm:$0xff]  }
   0x6   :  { %v1669_v15 = vld [vmem:[%s2074_s0 + $0x98] sm:$0xff]   ;;  %v1670_v16 = vld [vmem:[%s2074_s0 + $0x20] sm:$0xff]   ;;  %v1672_v18 = vld [vmem:[%s2074_s0 + $0x28] sm:$0xff]  }
   0x7   :  { %1561 = vmatpush3.bf16.msra.mxu0 %v1655_v1  ;;  %1647 = vmatpush3.bf16.msra.mxu1 %v1655_v1  ;;  %v1671_v17 = vld [vmem:[%s2074_s0 + $0xa0] sm:$0xff]   ;;  %v1673_v19 = vld [vmem:[%s2074_s0 + $0xa8] sm:$0xff]   ;;  %v1674_v20 = vld [vmem:[%s2074_s0 + $0x30] sm:$0xff]  }
   0x8   :  { %1562 = vmatprep.subr.bf16.mxu0 %v1656_v2  ;;  %1640 = vmatprep.subr.bf16.mxu1 %v1656_v2  ;;  %v1675_v21 = vld [vmem:[%s2074_s0 + $0xb0] sm:$0xff]   ;;  %v1676_v22 = vld [vmem:[%s2074_s0 + $0x38] sm:$0xff]   ;;  %v1678_v24 = vld [vmem:[%s2074_s0 + $0x40] sm:$0xff]  }
   0x9   :  { %v1677_v23 = vld [vmem:[%s2074_s0 + $0xb8] sm:$0xff]   ;;  %v1679_v25 = vld [vmem:[%s2074_s0 + $0xc0] sm:$0xff]   ;;  %v1680_v26 = vld [vmem:[%s2074_s0 + $0x48] sm:$0xff]  }
   0xa   :  { %v1681_v27 = vld [vmem:[%s2074_s0 + $0xc8] sm:$0xff]   ;;  %v1682_v28 = vld [vmem:[%s2074_s0 + $0x50] sm:$0xff]   ;;  %v1684_v30 = vld [vmem:[%s2074_s0 + $0x58] sm:$0xff]  }
   0xb   :  { %1563 = vmatpush3.bf16.msra.mxu0 %v1656_v2  ;;  %1648 = vmatpush3.bf16.msra.mxu1 %v1656_v2  ;;  %v1683_v29 = vld [vmem:[%s2074_s0 + $0xd0] sm:$0xff]   ;;  %v1685_v31 = vld [vmem:[%s2074_s0 + $0xd8] sm:$0xff]   ;;  %v1686_v32 = vld [vmem:[%s2074_s0 + $0x60] sm:$0xff]  }
   0xc   :  { %1564 = vmatprep.subr.bf16.mxu0 %v1657_v3  ;;  %1641 = vmatprep.subr.bf16.mxu1 %v1657_v3  ;;  %v1687_v33 = vld [vmem:[%s2074_s0 + $0xe0] sm:$0xff]   ;;  %v1688_v34 = vld [vmem:[%s2074_s0 + $0x68] sm:$0xff]   ;;  %v1690_v36 = vld [vmem:[%s2074_s0 + $0x70] sm:$0xff]  }
   0xd   :  { %v1689_v35 = vld [vmem:[%s2074_s0 + $0xe8] sm:$0xff]   ;;  %v1691_v37 = vld [vmem:[%s2074_s0 + $0xf0] sm:$0xff]   ;;  %v1692_v38 = vld [vmem:[%s2074_s0 + $0x78] sm:$0xff]  }
   0xe   :  { %v1693_v39 = vld [vmem:[%s2074_s0 + $0xf8] sm:$0xff]   ;;  %v1842_v40 = vld [vmem:[%s2075_s2] ss:$0 sm:$0xff] }
   0xf   :  { %1565 = vmatpush3.bf16.msra.mxu0 %v1657_v3  ;;  %1649 = vmatpush3.bf16.msra.mxu1 %v1657_v3  ;;  %v1849_v45 = vld [vmem:[%s2076_s3] ss:$0 sm:$0xff] }
  0x10   :  { %1566 = vmatprep.subr.bf16.mxu0 %v1658_v6  ;;  %1642 = vmatprep.subr.bf16.mxu1 %v1658_v6 }
  0x13   :  { %1567 = vmatpush3.bf16.msra.mxu0 %v1658_v6  ;;  %1650 = vmatpush3.bf16.msra.mxu1 %v1658_v6 }
  0x14   :  { %1568 = vmatprep.subr.bf16.mxu0 %v1659_v7  ;;  %1643 = vmatprep.subr.bf16.mxu1 %v1659_v7 }
  0x17   :  { %1569 = vmatpush3.bf16.msra.mxu0 %v1659_v7  ;;  %1651 = vmatpush3.bf16.msra.mxu1 %v1659_v7 }
  0x18   :  { %1570 = vmatprep.subr.bf16.mxu0 %v1660_v8  ;;  %1644 = vmatprep.subr.bf16.mxu1 %v1660_v8 }
  0x1b   :  { %1571 = vmatpush3.bf16.msra.mxu0 %v1660_v8  ;;  %1652 = vmatpush3.bf16.msra.mxu1 %v1660_v8 }
  0x1c   :  { %1572 = vmatprep.subr.bf16.mxu0 %v1661_v9  ;;  %1645 = vmatprep.subr.bf16.mxu1 %v1661_v9 }
  0x1f   :  { %1573 = vmatpush3.bf16.msra.mxu0 %v1661_v9  ;;  %1653 = vmatpush3.bf16.msra.mxu1 %v1661_v9 }
  0x22   :  { %1575 = vmatmul.mubr.bf16.vlgmr.msra.gmra.mxu0 %v1664_v10  ;;  %1607 = vmatmul.mubr.bf16.vlgmr.msra.gmra.mxu1 %v1665_v11 }
  0x23   :  { %1578 = vmatprep.mubr.bf16.mxu0 %v1666_v12  ;;  %1610 = vmatprep.mubr.bf16.mxu1 %v1667_v13 }
  0x2a   :  { %1579 = vmatmul.mubr.bf16.gmra.mxu0 %v1668_v14  ;;  %1611 = vmatmul.mubr.bf16.gmra.mxu1 %v1669_v15 }
  0x2b   :  { %1582 = vmatprep.mubr.bf16.mxu0 %v1670_v16  ;;  %1614 = vmatprep.mubr.bf16.mxu1 %v1671_v17 }
  0x32   :  { %1583 = vmatmul.mubr.bf16.gmra.mxu0 %v1672_v18  ;;  %1615 = vmatmul.mubr.bf16.gmra.mxu1 %v1673_v19 }
  0x33   :  { %1586 = vmatprep.mubr.bf16.mxu0 %v1674_v20  ;;  %1618 = vmatprep.mubr.bf16.mxu1 %v1675_v21 }
  0x3a   :  { %1587 = vmatmul.mubr.bf16.gmra.mxu0 %v1676_v22  ;;  %1619 = vmatmul.mubr.bf16.gmra.mxu1 %v1677_v23 }
  0x3b   :  { %1590 = vmatprep.mubr.bf16.mxu0 %v1678_v24  ;;  %1622 = vmatprep.mubr.bf16.mxu1 %v1679_v25 }
  0x42   :  { %1591 = vmatmul.mubr.bf16.gmra.mxu0 %v1680_v26  ;;  %1623 = vmatmul.mubr.bf16.gmra.mxu1 %v1681_v27 }
  0x43   :  { %1594 = vmatprep.mubr.bf16.mxu0 %v1682_v28  ;;  %1626 = vmatprep.mubr.bf16.mxu1 %v1683_v29 }
  0x4a   :  { %1595 = vmatmul.mubr.bf16.gmra.mxu0 %v1684_v30  ;;  %1627 = vmatmul.mubr.bf16.gmra.mxu1 %v1685_v31 }
  0x4b   :  { %1598 = vmatprep.mubr.bf16.mxu0 %v1686_v32  ;;  %1630 = vmatprep.mubr.bf16.mxu1 %v1687_v33 }
  0x52   :  { %1599 = vmatmul.mubr.bf16.gmra.mxu0 %v1688_v34  ;;  %1631 = vmatmul.mubr.bf16.gmra.mxu1 %v1689_v35 }
  0x53   :  { %1602 = vmatprep.mubr.bf16.mxu0 %v1690_v36  ;;  %1634 = vmatprep.mubr.bf16.mxu1 %v1691_v37 }
  0x5a   :  { %1603 = vmatmul.mubr.bf16.gmra.mxu0 %v1692_v38  ;;  %1635 = vmatmul.mubr.bf16.gmra.mxu1 %v1693_v39 }
  0xe2   :  { %v1576_v41 = vpop.f32.mrf.mxu0  ;;  %v1608_v42 = vpop.f32.mrf.mxu1 }
  0xe3   :  { %v636_v43 = vmul.f32 %v1576_v41, %v1842_v40  ;;  %v668_v44 = vmul.f32 %v1608_v42, %v1842_v40 }
  0xe4   :  { %v372_v46 = vpop.f32.mrf.mxu0  ;;  %v500_v47 = vpop.f32.mrf.mxu1 }
  0xe5   :  { %v634_v48 = vmul.f32 %v1842_v40, %v372_v46  ;;  %v666_v49 = vmul.f32 %v1842_v40, %v500_v47  ;;  %v707_v52 = vadd.f32 %v1849_v45, %v636_v43  ;;  %v739_v53 = vadd.f32 %v1849_v45, %v668_v44 }
  0xe6   :  { %v1577_v50 = vpop.f32.mrf.mxu0  ;;  %v1609_v51 = vpop.f32.mrf.mxu1 }
  0xe7   :  { %v637_v54 = vmul.f32 %v1577_v50, %v1842_v40  ;;  %v669_v55 = vmul.f32 %v1609_v51, %v1842_v40  ;;  %v705_v58 = vadd.f32 %v1849_v45, %v634_v48  ;;  %v737_v59 = vadd.f32 %v1849_v45, %v666_v49 }
  0xe8   :  { %v375_v56 = vpop.f32.mrf.mxu0  ;;  %v503_v57 = vpop.f32.mrf.mxu1  ;;  %v771_v2 = vmax.f32 %v707_v52, 0.0  ;;  %v803_v3 = vmax.f32 %v739_v53, 0.0 }
  0xe9   :  { %v635_v60 = vmul.f32 %v1842_v40, %v375_v56  ;;  %v667_v61 = vmul.f32 %v1842_v40, %v503_v57  ;;  %v708_v62 = vadd.f32 %v1849_v45, %v637_v54  ;;  %v740_v63 = vadd.f32 %v1849_v45, %v669_v55 }
  0xea   :  { %v1580_v0 = vpop.f32.mrf.mxu0  ;;  %v1612_v1 = vpop.f32.mrf.mxu1  ;;  %v769_v12 = vmax.f32 %v705_v58, 0.0  ;;  %v801_v13 = vmax.f32 %v737_v59, 0.0 }
  0xeb   :  { %v706_v4 = vadd.f32 %v1849_v45, %v635_v60  ;;  %v738_v5 = vadd.f32 %v1849_v45, %v667_v61  ;;  %v772_v6 = vmax.f32 %v708_v62, 0.0  ;;  %v804_v7 = vmax.f32 %v740_v63, 0.0 }
  0xec   :  { %v640_v8 = vmul.f32 %v1580_v0, %v1842_v40  ;;  %v672_v9 = vmul.f32 %v1612_v1, %v1842_v40  ;;  %v388_v10 = vpop.f32.mrf.mxu0  ;;  %v516_v11 = vpop.f32.mrf.mxu1 }
  0xed   :  { %v770_v14 = vmax.f32 %v706_v4, 0.0  ;;  %v802_v15 = vmax.f32 %v738_v5, 0.0  ;;  %v1335_v16 = vpack.c.bf16 %v772_v6, %v771_v2  ;;  %v1415_v17 = vpack.c.bf16 %v804_v7, %v803_v3 }
  0xee   :  { %v638_v18 = vmul.f32 %v1842_v40, %v388_v10  ;;  %v670_v19 = vmul.f32 %v1842_v40, %v516_v11  ;;  %v1581_v20 = vpop.f32.mrf.mxu0  ;;  %v1613_v21 = vpop.f32.mrf.mxu1  ;;  %v711_v24 = vadd.f32 %v1849_v45, %v640_v8  ;;  %v743_v25 = vadd.f32 %v1849_v45, %v672_v9 }
  0xef   :  { %v1330_v22 = vpack.c.bf16 %v770_v14, %v769_v12  ;;  %v1410_v23 = vpack.c.bf16 %v802_v15, %v801_v13  ;;  %1487 = vst [vmem:[%s2077_s4 + $0x8] sm:$0xff] %v1335_v16   ;;  %1503 = vst [vmem:[%s2077_s4 + $0x88] sm:$0xff] %v1415_v17   ;;  %v641_v26 = vmul.f32 %v1581_v20, %v1842_v40 }
  0xf0   :  { %v673_v27 = vmul.f32 %v1613_v21, %v1842_v40  ;;  %v391_v28 = vpop.f32.mrf.mxu0  ;;  %v519_v29 = vpop.f32.mrf.mxu1  ;;  %v709_v30 = vadd.f32 %v1849_v45, %v638_v18  ;;  %v741_v31 = vadd.f32 %v1849_v45, %v670_v19  ;;  %v775_v43 = vmax.f32 %v711_v24, 0.0 }
  0xf1   :  { %1331 = vst [vmem:[%s2077_s4] sm:$0xff] %v1330_v22   ;;  %1502 = vst [vmem:[%s2077_s4 + $0x80] sm:$0xff] %v1410_v23   ;;  %v639_v32 = vmul.f32 %v1842_v40, %v391_v28  ;;  %v671_v33 = vmul.f32 %v1842_v40, %v519_v29  ;;  %v712_v34 = vadd.f32 %v1849_v45, %v641_v26  ;;  %v807_v44 = vmax.f32 %v743_v25, 0.0 }
  0xf2   :  { %v744_v35 = vadd.f32 %v1849_v45, %v673_v27  ;;  %v1584_v36 = vpop.f32.mrf.mxu0  ;;  %v1616_v37 = vpop.f32.mrf.mxu1  ;;  %v773_v50 = vmax.f32 %v709_v30, 0.0  ;;  %v805_v51 = vmax.f32 %v741_v31, 0.0 }
  0xf3   :  { %v710_v38 = vadd.f32 %v1849_v45, %v639_v32  ;;  %v742_v39 = vadd.f32 %v1849_v45, %v671_v33  ;;  %v644_v41 = vmul.f32 %v1584_v36, %v1842_v40  ;;  %v676_v42 = vmul.f32 %v1616_v37, %v1842_v40 }
  0xf4   :  { %v776_v46 = vmax.f32 %v712_v34, 0.0  ;;  %v808_v47 = vmax.f32 %v744_v35, 0.0  ;;  %v404_v48 = vpop.f32.mrf.mxu0  ;;  %v532_v49 = vpop.f32.mrf.mxu1 }
  0xf5   :  { %v774_v52 = vmax.f32 %v710_v38, 0.0  ;;  %v806_v53 = vmax.f32 %v742_v39, 0.0  ;;  %v642_v56 = vmul.f32 %v1842_v40, %v404_v48  ;;  %v674_v57 = vmul.f32 %v1842_v40, %v532_v49 }
  0xf6   :  { %v1345_v54 = vpack.c.bf16 %v776_v46, %v775_v43  ;;  %v1425_v55 = vpack.c.bf16 %v808_v47, %v807_v44  ;;  %v1585_v58 = vpop.f32.mrf.mxu0  ;;  %v1617_v59 = vpop.f32.mrf.mxu1  ;;  %v715_v62 = vadd.f32 %v1849_v45, %v644_v41  ;;  %v747_v63 = vadd.f32 %v1849_v45, %v676_v42 }
  0xf7   :  { %v1340_v60 = vpack.c.bf16 %v774_v52, %v773_v50  ;;  %v1420_v61 = vpack.c.bf16 %v806_v53, %v805_v51  ;;  %v645_v0 = vmul.f32 %v1585_v58, %v1842_v40  ;;  %v677_v1 = vmul.f32 %v1617_v59, %v1842_v40 }
  0xf8   :  { %1489 = vst [vmem:[%s2077_s4 + $0x18] sm:$0xff] %v1345_v54   ;;  %1505 = vst [vmem:[%s2077_s4 + $0x98] sm:$0xff] %v1425_v55   ;;  %v407_v2 = vpop.f32.mrf.mxu0  ;;  %v535_v3 = vpop.f32.mrf.mxu1  ;;  %v713_v4 = vadd.f32 %v1849_v45, %v642_v56  ;;  %v745_v5 = vadd.f32 %v1849_v45, %v674_v57  ;;  %v779_v12 = vmax.f32 %v715_v62, 0.0  ;;  %v811_v13 = vmax.f32 %v747_v63, 0.0 }
  0xf9   :  { %1488 = vst [vmem:[%s2077_s4 + $0x10] sm:$0xff] %v1340_v60   ;;  %1504 = vst [vmem:[%s2077_s4 + $0x90] sm:$0xff] %v1420_v61   ;;  %v643_v6 = vmul.f32 %v1842_v40, %v407_v2  ;;  %v675_v7 = vmul.f32 %v1842_v40, %v535_v3  ;;  %v716_v8 = vadd.f32 %v1849_v45, %v645_v0 }
  0xfa   :  { %v748_v9 = vadd.f32 %v1849_v45, %v677_v1  ;;  %v1588_v10 = vpop.f32.mrf.mxu0  ;;  %v1620_v11 = vpop.f32.mrf.mxu1  ;;  %v777_v22 = vmax.f32 %v713_v4, 0.0  ;;  %v809_v23 = vmax.f32 %v745_v5, 0.0 }
  0xfb   :  { %v714_v14 = vadd.f32 %v1849_v45, %v643_v6  ;;  %v746_v15 = vadd.f32 %v1849_v45, %v675_v7  ;;  %v780_v16 = vmax.f32 %v716_v8, 0.0  ;;  %v648_v18 = vmul.f32 %v1588_v10, %v1842_v40 }
  0xfc   :  { %v812_v17 = vmax.f32 %v748_v9, 0.0  ;;  %v680_v19 = vmul.f32 %v1620_v11, %v1842_v40  ;;  %v420_v20 = vpop.f32.mrf.mxu0  ;;  %v548_v21 = vpop.f32.mrf.mxu1 }
  0xfd   :  { %v778_v24 = vmax.f32 %v714_v14, 0.0  ;;  %v810_v25 = vmax.f32 %v746_v15, 0.0  ;;  %v1355_v26 = vpack.c.bf16 %v780_v16, %v779_v12  ;;  %v646_v28 = vmul.f32 %v1842_v40, %v420_v20 }
  0xfe   :  { %v1435_v27 = vpack.c.bf16 %v812_v17, %v811_v13  ;;  %v678_v29 = vmul.f32 %v1842_v40, %v548_v21  ;;  %v1589_v30 = vpop.f32.mrf.mxu0  ;;  %v1621_v31 = vpop.f32.mrf.mxu1  ;;  %v719_v34 = vadd.f32 %v1849_v45, %v648_v18  ;;  %v751_v35 = vadd.f32 %v1849_v45, %v680_v19 }
  0xff   :  { %v1350_v32 = vpack.c.bf16 %v778_v24, %v777_v22  ;;  %v1430_v33 = vpack.c.bf16 %v810_v25, %v809_v23  ;;  %1491 = vst [vmem:[%s2077_s4 + $0x28] sm:$0xff] %v1355_v26   ;;  %v649_v36 = vmul.f32 %v1589_v30, %v1842_v40  ;;  %v681_v37 = vmul.f32 %v1621_v31, %v1842_v40 }
 0x100   :  { %1507 = vst [vmem:[%s2077_s4 + $0xa8] sm:$0xff] %v1435_v27   ;;  %v423_v38 = vpop.f32.mrf.mxu0  ;;  %v551_v39 = vpop.f32.mrf.mxu1  ;;  %v717_v41 = vadd.f32 %v1849_v45, %v646_v28  ;;  %v749_v42 = vadd.f32 %v1849_v45, %v678_v29  ;;  %v783_v54 = vmax.f32 %v719_v34, 0.0  ;;  %v815_v55 = vmax.f32 %v751_v35, 0.0 }
 0x101   :  { %1490 = vst [vmem:[%s2077_s4 + $0x20] sm:$0xff] %v1350_v32   ;;  %1506 = vst [vmem:[%s2077_s4 + $0xa0] sm:$0xff] %v1430_v33   ;;  %v647_v43 = vmul.f32 %v1842_v40, %v423_v38  ;;  %v679_v44 = vmul.f32 %v1842_v40, %v551_v39  ;;  %v720_v46 = vadd.f32 %v1849_v45, %v649_v36 }
 0x102   :  { %v752_v47 = vadd.f32 %v1849_v45, %v681_v37  ;;  %v1592_v48 = vpop.f32.mrf.mxu0  ;;  %v1624_v49 = vpop.f32.mrf.mxu1  ;;  %v781_v60 = vmax.f32 %v717_v41, 0.0  ;;  %v813_v61 = vmax.f32 %v749_v42, 0.0 }
 0x103   :  { %v718_v50 = vadd.f32 %v1849_v45, %v647_v43  ;;  %v750_v51 = vadd.f32 %v1849_v45, %v679_v44  ;;  %v652_v52 = vmul.f32 %v1592_v48, %v1842_v40  ;;  %v684_v53 = vmul.f32 %v1624_v49, %v1842_v40 }
 0x104   :  { %v784_v56 = vmax.f32 %v720_v46, 0.0  ;;  %v816_v57 = vmax.f32 %v752_v47, 0.0  ;;  %v436_v58 = vpop.f32.mrf.mxu0  ;;  %v564_v59 = vpop.f32.mrf.mxu1 }
 0x105   :  { %v782_v62 = vmax.f32 %v718_v50, 0.0  ;;  %v814_v63 = vmax.f32 %v750_v51, 0.0  ;;  %v650_v2 = vmul.f32 %v1842_v40, %v436_v58  ;;  %v682_v3 = vmul.f32 %v1842_v40, %v564_v59 }
 0x106   :  { %v1365_v0 = vpack.c.bf16 %v784_v56, %v783_v54  ;;  %v1445_v1 = vpack.c.bf16 %v816_v57, %v815_v55  ;;  %v1593_v4 = vpop.f32.mrf.mxu0  ;;  %v1625_v5 = vpop.f32.mrf.mxu1  ;;  %v723_v8 = vadd.f32 %v1849_v45, %v652_v52  ;;  %v755_v9 = vadd.f32 %v1849_v45, %v684_v53 }
 0x107   :  { %v1360_v6 = vpack.c.bf16 %v782_v62, %v781_v60  ;;  %v1440_v7 = vpack.c.bf16 %v814_v63, %v813_v61  ;;  %v653_v10 = vmul.f32 %v1593_v4, %v1842_v40  ;;  %v685_v11 = vmul.f32 %v1625_v5, %v1842_v40 }
 0x108   :  { %1493 = vst [vmem:[%s2077_s4 + $0x38] sm:$0xff] %v1365_v0   ;;  %1509 = vst [vmem:[%s2077_s4 + $0xb8] sm:$0xff] %v1445_v1   ;;  %v439_v12 = vpop.f32.mrf.mxu0  ;;  %v567_v13 = vpop.f32.mrf.mxu1  ;;  %v721_v14 = vadd.f32 %v1849_v45, %v650_v2  ;;  %v753_v15 = vadd.f32 %v1849_v45, %v682_v3  ;;  %v787_v22 = vmax.f32 %v723_v8, 0.0  ;;  %v819_v23 = vmax.f32 %v755_v9, 0.0 }
 0x109   :  { %1492 = vst [vmem:[%s2077_s4 + $0x30] sm:$0xff] %v1360_v6   ;;  %1508 = vst [vmem:[%s2077_s4 + $0xb0] sm:$0xff] %v1440_v7   ;;  %v651_v16 = vmul.f32 %v1842_v40, %v439_v12  ;;  %v683_v17 = vmul.f32 %v1842_v40, %v567_v13  ;;  %v724_v18 = vadd.f32 %v1849_v45, %v653_v10 }
 0x10a   :  { %v756_v19 = vadd.f32 %v1849_v45, %v685_v11  ;;  %v1596_v20 = vpop.f32.mrf.mxu0  ;;  %v1628_v21 = vpop.f32.mrf.mxu1  ;;  %v785_v32 = vmax.f32 %v721_v14, 0.0  ;;  %v817_v33 = vmax.f32 %v753_v15, 0.0 }
 0x10b   :  { %v722_v24 = vadd.f32 %v1849_v45, %v651_v16  ;;  %v754_v25 = vadd.f32 %v1849_v45, %v683_v17  ;;  %v788_v26 = vmax.f32 %v724_v18, 0.0  ;;  %v656_v28 = vmul.f32 %v1596_v20, %v1842_v40 }
 0x10c   :  { %v820_v27 = vmax.f32 %v756_v19, 0.0  ;;  %v688_v29 = vmul.f32 %v1628_v21, %v1842_v40  ;;  %v452_v30 = vpop.f32.mrf.mxu0  ;;  %v580_v31 = vpop.f32.mrf.mxu1 }
 0x10d   :  { %v786_v34 = vmax.f32 %v722_v24, 0.0  ;;  %v818_v35 = vmax.f32 %v754_v25, 0.0  ;;  %v1375_v36 = vpack.c.bf16 %v788_v26, %v787_v22  ;;  %v654_v38 = vmul.f32 %v1842_v40, %v452_v30 }
 0x10e   :  { %v1455_v37 = vpack.c.bf16 %v820_v27, %v819_v23  ;;  %v686_v39 = vmul.f32 %v1842_v40, %v580_v31  ;;  %v1597_v41 = vpop.f32.mrf.mxu0  ;;  %v1629_v42 = vpop.f32.mrf.mxu1  ;;  %v727_v46 = vadd.f32 %v1849_v45, %v656_v28  ;;  %v759_v47 = vadd.f32 %v1849_v45, %v688_v29 }
 0x10f   :  { %v1370_v43 = vpack.c.bf16 %v786_v34, %v785_v32  ;;  %v1450_v44 = vpack.c.bf16 %v818_v35, %v817_v33  ;;  %1495 = vst [vmem:[%s2077_s4 + $0x48] sm:$0xff] %v1375_v36   ;;  %v657_v48 = vmul.f32 %v1597_v41, %v1842_v40  ;;  %v689_v49 = vmul.f32 %v1629_v42, %v1842_v40 }
 0x110   :  { %1511 = vst [vmem:[%s2077_s4 + $0xc8] sm:$0xff] %v1455_v37   ;;  %v455_v50 = vpop.f32.mrf.mxu0  ;;  %v583_v51 = vpop.f32.mrf.mxu1  ;;  %v725_v52 = vadd.f32 %v1849_v45, %v654_v38  ;;  %v757_v53 = vadd.f32 %v1849_v45, %v686_v39  ;;  %v791_v0 = vmax.f32 %v727_v46, 0.0  ;;  %v823_v1 = vmax.f32 %v759_v47, 0.0 }
 0x111   :  { %1494 = vst [vmem:[%s2077_s4 + $0x40] sm:$0xff] %v1370_v43   ;;  %1510 = vst [vmem:[%s2077_s4 + $0xc0] sm:$0xff] %v1450_v44   ;;  %v655_v54 = vmul.f32 %v1842_v40, %v455_v50  ;;  %v687_v55 = vmul.f32 %v1842_v40, %v583_v51  ;;  %v728_v56 = vadd.f32 %v1849_v45, %v657_v48 }
 0x112   :  { %v760_v57 = vadd.f32 %v1849_v45, %v689_v49  ;;  %v1600_v58 = vpop.f32.mrf.mxu0  ;;  %v1632_v59 = vpop.f32.mrf.mxu1  ;;  %v789_v6 = vmax.f32 %v725_v52, 0.0  ;;  %v821_v7 = vmax.f32 %v757_v53, 0.0 }
 0x113   :  { %v726_v60 = vadd.f32 %v1849_v45, %v655_v54  ;;  %v758_v61 = vadd.f32 %v1849_v45, %v687_v55  ;;  %v660_v62 = vmul.f32 %v1600_v58, %v1842_v40  ;;  %v692_v63 = vmul.f32 %v1632_v59, %v1842_v40 }
 0x114   :  { %v792_v2 = vmax.f32 %v728_v56, 0.0  ;;  %v824_v3 = vmax.f32 %v760_v57, 0.0  ;;  %v468_v4 = vpop.f32.mrf.mxu0  ;;  %v596_v5 = vpop.f32.mrf.mxu1 }
 0x115   :  { %v790_v8 = vmax.f32 %v726_v60, 0.0  ;;  %v822_v9 = vmax.f32 %v758_v61, 0.0  ;;  %v658_v12 = vmul.f32 %v1842_v40, %v468_v4  ;;  %v690_v13 = vmul.f32 %v1842_v40, %v596_v5 }
 0x116   :  { %v1385_v10 = vpack.c.bf16 %v792_v2, %v791_v0  ;;  %v1465_v11 = vpack.c.bf16 %v824_v3, %v823_v1  ;;  %v1601_v14 = vpop.f32.mrf.mxu0  ;;  %v1633_v15 = vpop.f32.mrf.mxu1  ;;  %v731_v18 = vadd.f32 %v1849_v45, %v660_v62  ;;  %v763_v19 = vadd.f32 %v1849_v45, %v692_v63 }
 0x117   :  { %v1380_v16 = vpack.c.bf16 %v790_v8, %v789_v6  ;;  %v1460_v17 = vpack.c.bf16 %v822_v9, %v821_v7  ;;  %v661_v20 = vmul.f32 %v1601_v14, %v1842_v40  ;;  %v693_v21 = vmul.f32 %v1633_v15, %v1842_v40 }
 0x118   :  { %1497 = vst [vmem:[%s2077_s4 + $0x58] sm:$0xff] %v1385_v10   ;;  %1513 = vst [vmem:[%s2077_s4 + $0xd8] sm:$0xff] %v1465_v11   ;;  %v471_v22 = vpop.f32.mrf.mxu0  ;;  %v599_v23 = vpop.f32.mrf.mxu1  ;;  %v729_v24 = vadd.f32 %v1849_v45, %v658_v12  ;;  %v761_v25 = vadd.f32 %v1849_v45, %v690_v13  ;;  %v795_v32 = vmax.f32 %v731_v18, 0.0  ;;  %v827_v33 = vmax.f32 %v763_v19, 0.0 }
 0x119   :  { %1496 = vst [vmem:[%s2077_s4 + $0x50] sm:$0xff] %v1380_v16   ;;  %1512 = vst [vmem:[%s2077_s4 + $0xd0] sm:$0xff] %v1460_v17   ;;  %v659_v26 = vmul.f32 %v1842_v40, %v471_v22  ;;  %v691_v27 = vmul.f32 %v1842_v40, %v599_v23  ;;  %v732_v28 = vadd.f32 %v1849_v45, %v661_v20 }
 0x11a   :  { %v764_v29 = vadd.f32 %v1849_v45, %v693_v21  ;;  %v1604_v30 = vpop.f32.mrf.mxu0  ;;  %v1636_v31 = vpop.f32.mrf.mxu1  ;;  %v793_v43 = vmax.f32 %v729_v24, 0.0  ;;  %v825_v44 = vmax.f32 %v761_v25, 0.0 }
 0x11b   :  { %v730_v34 = vadd.f32 %v1849_v45, %v659_v26  ;;  %v762_v35 = vadd.f32 %v1849_v45, %v691_v27  ;;  %v796_v36 = vmax.f32 %v732_v28, 0.0  ;;  %v664_v38 = vmul.f32 %v1604_v30, %v1842_v40 }
 0x11c   :  { %v828_v37 = vmax.f32 %v764_v29, 0.0  ;;  %v696_v39 = vmul.f32 %v1636_v31, %v1842_v40  ;;  %v484_v41 = vpop.f32.mrf.mxu0  ;;  %v612_v42 = vpop.f32.mrf.mxu1 }
 0x11d   :  { %v794_v46 = vmax.f32 %v730_v34, 0.0  ;;  %v826_v47 = vmax.f32 %v762_v35, 0.0  ;;  %v1395_v48 = vpack.c.bf16 %v796_v36, %v795_v32  ;;  %v662_v50 = vmul.f32 %v1842_v40, %v484_v41 }
 0x11e   :  { %v1475_v49 = vpack.c.bf16 %v828_v37, %v827_v33  ;;  %v694_v51 = vmul.f32 %v1842_v40, %v612_v42  ;;  %v1605_v52 = vpop.f32.mrf.mxu0  ;;  %v1637_v53 = vpop.f32.mrf.mxu1  ;;  %v735_v56 = vadd.f32 %v1849_v45, %v664_v38  ;;  %v767_v57 = vadd.f32 %v1849_v45, %v696_v39 }
 0x11f   :  { %v1390_v54 = vpack.c.bf16 %v794_v46, %v793_v43  ;;  %v1470_v55 = vpack.c.bf16 %v826_v47, %v825_v44  ;;  %1499 = vst [vmem:[%s2077_s4 + $0x68] sm:$0xff] %v1395_v48   ;;  %v665_v58 = vmul.f32 %v1605_v52, %v1842_v40  ;;  %v697_v59 = vmul.f32 %v1637_v53, %v1842_v40 }
 0x120   :  { %1515 = vst [vmem:[%s2077_s4 + $0xe8] sm:$0xff] %v1475_v49   ;;  %v487_v60 = vpop.f32.mrf.mxu0  ;;  %v615_v61 = vpop.f32.mrf.mxu1  ;;  %v733_v62 = vadd.f32 %v1849_v45, %v662_v50  ;;  %v765_v63 = vadd.f32 %v1849_v45, %v694_v51  ;;  %v799_v6 = vmax.f32 %v735_v56, 0.0  ;;  %v831_v7 = vmax.f32 %v767_v57, 0.0 }
 0x121   :  { %1498 = vst [vmem:[%s2077_s4 + $0x60] sm:$0xff] %v1390_v54   ;;  %1514 = vst [vmem:[%s2077_s4 + $0xe0] sm:$0xff] %v1470_v55   ;;  %v663_v0 = vmul.f32 %v1842_v40, %v487_v60  ;;  %v695_v1 = vmul.f32 %v1842_v40, %v615_v61  ;;  %v736_v2 = vadd.f32 %v1849_v45, %v665_v58 }
 0x122   :  { %v768_v3 = vadd.f32 %v1849_v45, %v697_v59  ;;  %v797_v10 = vmax.f32 %v733_v62, 0.0  ;;  %v829_v11 = vmax.f32 %v765_v63, 0.0 }
 0x123   :  { %v734_v4 = vadd.f32 %v1849_v45, %v663_v0  ;;  %v766_v5 = vadd.f32 %v1849_v45, %v695_v1  ;;  %v800_v8 = vmax.f32 %v736_v2, 0.0 }
 0x124   :  { %v832_v9 = vmax.f32 %v768_v3, 0.0 }
 0x125   :  { %v798_v12 = vmax.f32 %v734_v4, 0.0  ;;  %v830_v13 = vmax.f32 %v766_v5, 0.0  ;;  %v1405_v14 = vpack.c.bf16 %v800_v8, %v799_v6 }
 0x126   :  { %v1485_v15 = vpack.c.bf16 %v832_v9, %v831_v7 }
 0x127   :  { %v1400_v16 = vpack.c.bf16 %v798_v12, %v797_v10  ;;  %v1480_v40 = vpack.c.bf16 %v830_v13, %v829_v11  ;;  %1501 = vst [vmem:[%s2077_s4 + $0x78] sm:$0xff] %v1405_v14  }
 0x128   :  { %1517 = vst [vmem:[%s2077_s4 + $0xf8] sm:$0xff] %v1485_v15  }
 0x129   :  { %1500 = vst [vmem:[%s2077_s4 + $0x70] sm:$0xff] %v1400_v16   ;;  %1516 = vst [vmem:[%s2077_s4 + $0xf0] sm:$0xff] %v1480_v40  }

// kernel: bottleneck3d_forward.5
= control target key start
LH: loop header
LB: loop body
LE: loop exit
PB: predicated region body
PF: predicated region fallthrough
CT: control target
= control target key end

     0   :  { %s1544_s1 = inlined_call_operand.vmem [shape: bf16[128,128], index: 1, kind: input, shape index: {}]   ;;  %s1545_s5 = inlined_call_operand.vmem [shape: bf16[128,128], index: 5, kind: input, shape index: {}]   ;;  %s1546_s0 = inlined_call_operand.vmem [shape: bf16[192,128], index: 0, kind: input, shape index: {}]   ;;  %s1547_s4 = inlined_call_operand.vmem [shape: bf16[192,128], index: 4, kind: input, shape index: {}]   ;;  %s1548_s2 = inlined_call_operand.vmem [shape: f32[1,128], index: 2, kind: input, shape index: {}]   ;;  %s1549_s6 = inlined_call_operand.vmem [shape: f32[1,128], index: 6, kind: input, shape index: {}]   ;;  %s1550_s3 = inlined_call_operand.vmem [shape: f32[1,128], index: 3, kind: input, shape index: {}]   ;;  %s1551_s7 = inlined_call_operand.vmem [shape: f32[1,128], index: 7, kind: input, shape index: {}]   ;;  %s1552_s8 = inlined_call_operand.vmem [shape: bf16[192,128], index: 8, kind: output, shape index: {}]  }
   0x1   :  { %v1187_v0 = vld [vmem:[%s1544_s1 + $0x38] sm:$0xff]   ;;  %v1189_v2 = vld [vmem:[%s1544_s1 + $0x30] sm:$0xff]   ;;  %v1191_v4 = vld [vmem:[%s1544_s1 + $0x28] sm:$0xff]  }
   0x2   :  { %v1188_v1 = vld [vmem:[%s1545_s5 + $0x38] sm:$0xff]   ;;  %1107 = vmatprep.subr.bf16.mxu0 %v1187_v0  ;;  %v1190_v3 = vld [vmem:[%s1545_s5 + $0x30] sm:$0xff]   ;;  %v1192_v5 = vld [vmem:[%s1545_s5 + $0x28] sm:$0xff]  }
   0x3   :  { %1147 = vmatprep.subr.bf16.mxu1 %v1188_v1  ;;  %1108 = vmatpush3.bf16.msra.mxu0 %v1187_v0  ;;  %v1193_v6 = vld [vmem:[%s1544_s1 + $0x20] sm:$0xff]   ;;  %v1195_v8 = vld [vmem:[%s1544_s1 + $0x18] sm:$0xff]   ;;  %v1197_v10 = vld [vmem:[%s1544_s1 + $0x10] sm:$0xff]  }
   0x4   :  { %1148 = vmatpush3.bf16.msra.mxu1 %v1188_v1  ;;  %1109 = vmatprep.subr.bf16.mxu0 %v1189_v2  ;;  %v1194_v7 = vld [vmem:[%s1545_s5 + $0x20] sm:$0xff]   ;;  %v1196_v9 = vld [vmem:[%s1545_s5 + $0x18] sm:$0xff]   ;;  %v1198_v11 = vld [vmem:[%s1545_s5 + $0x10] sm:$0xff]  }
   0x5   :  { %1149 = vmatprep.subr.bf16.mxu1 %v1190_v3  ;;  %v1203_v12 = vld [vmem:[%s1546_s0] sm:$0xff]   ;;  %v1199_v14 = vld [vmem:[%s1544_s1 + $0x8] sm:$0xff]   ;;  %v1207_v20 = vld [vmem:[%s1546_s0 + $0x10] sm:$0xff]  }
   0x6   :  { %v1204_v13 = vld [vmem:[%s1547_s4] sm:$0xff]   ;;  %1123 = vmatprep.mubr.bf16.mxu0 %v1203_v12  ;;  %v1200_v15 = vld [vmem:[%s1545_s5 + $0x8] sm:$0xff]   ;;  %v1208_v21 = vld [vmem:[%s1547_s4 + $0x10] sm:$0xff]  }
   0x7   :  { %1110 = vmatpush3.bf16.msra.mxu0 %v1189_v2  ;;  %1163 = vmatprep.mubr.bf16.mxu1 %v1204_v13  ;;  %v1201_v16 = vld [vmem:[%s1544_s1] sm:$0xff]   ;;  %v1205_v18 = vld [vmem:[%s1546_s0 + $0x8] sm:$0xff]   ;;  %v1209_v22 = vld [vmem:[%s1546_s0 + $0x18] sm:$0xff]  }
   0x8   :  { %1150 = vmatpush3.bf16.msra.mxu1 %v1190_v3  ;;  %1111 = vmatprep.subr.bf16.mxu0 %v1191_v4  ;;  %v1202_v17 = vld [vmem:[%s1545_s5] sm:$0xff]   ;;  %v1206_v19 = vld [vmem:[%s1547_s4 + $0x8] sm:$0xff]   ;;  %v1210_v23 = vld [vmem:[%s1547_s4 + $0x18] sm:$0xff]  }
   0x9   :  { %1151 = vmatprep.subr.bf16.mxu1 %v1192_v5  ;;  %v1211_v24 = vld [vmem:[%s1546_s0 + $0x20] sm:$0xff]   ;;  %v1213_v26 = vld [vmem:[%s1546_s0 + $0x28] sm:$0xff]   ;;  %v1215_v28 = vld [vmem:[%s1546_s0 + $0x30] sm:$0xff]  }
   0xa   :  { %v1212_v25 = vld [vmem:[%s1547_s4 + $0x20] sm:$0xff]   ;;  %v1214_v27 = vld [vmem:[%s1547_s4 + $0x28] sm:$0xff]   ;;  %v1216_v29 = vld [vmem:[%s1547_s4 + $0x30] sm:$0xff]  }
   0xb   :  { %1112 = vmatpush3.bf16.msra.mxu0 %v1191_v4  ;;  %v1217_v30 = vld [vmem:[%s1546_s0 + $0x38] sm:$0xff]   ;;  %v1219_v32 = vld [vmem:[%s1546_s0 + $0x40] sm:$0xff]   ;;  %v1221_v34 = vld [vmem:[%s1546_s0 + $0x48] sm:$0xff]  }
   0xc   :  { %1152 = vmatpush3.bf16.msra.mxu1 %v1192_v5  ;;  %1113 = vmatprep.subr.bf16.mxu0 %v1193_v6  ;;  %v1218_v31 = vld [vmem:[%s1547_s4 + $0x38] sm:$0xff]   ;;  %v1220_v33 = vld [vmem:[%s1547_s4 + $0x40] sm:$0xff]   ;;  %v1222_v35 = vld [vmem:[%s1547_s4 + $0x48] sm:$0xff]  }
   0xd   :  { %1153 = vmatprep.subr.bf16.mxu1 %v1194_v7  ;;  %v1223_v36 = vld [vmem:[%s1546_s0 + $0x50] sm:$0xff]   ;;  %v1225_v38 = vld [vmem:[%s1546_s0 + $0x58] sm:$0xff]   ;;  %v1395_v40 = vld [vmem:[%s1548_s2] ss:$0 sm:$0xff] }
   0xe   :  { %v1224_v37 = vld [vmem:[%s1547_s4 + $0x50] sm:$0xff]   ;;  %v1226_v39 = vld [vmem:[%s1547_s4 + $0x58] sm:$0xff]   ;;  %v1400_v41 = vld [vmem:[%s1549_s6] ss:$0 sm:$0xff] }
   0xf   :  { %1114 = vmatpush3.bf16.msra.mxu0 %v1193_v6  ;;  %v1405_v43 = vld [vmem:[%s1550_s3] ss:$0 sm:$0xff] }
  0x10   :  { %1154 = vmatpush3.bf16.msra.mxu1 %v1194_v7  ;;  %1115 = vmatprep.subr.bf16.mxu0 %v1195_v8  ;;  %v1411_v46 = vld [vmem:[%s1551_s7] ss:$0 sm:$0xff] }
  0x11   :  { %1155 = vmatprep.subr.bf16.mxu1 %v1196_v9 }
  0x13   :  { %1116 = vmatpush3.bf16.msra.mxu0 %v1195_v8 }
  0x14   :  { %1156 = vmatpush3.bf16.msra.mxu1 %v1196_v9  ;;  %1117 = vmatprep.subr.bf16.mxu0 %v1197_v10 }
  0x15   :  { %1157 = vmatprep.subr.bf16.mxu1 %v1198_v11 }
  0x17   :  { %1118 = vmatpush3.bf16.msra.mxu0 %v1197_v10 }
  0x18   :  { %1158 = vmatpush3.bf16.msra.mxu1 %v1198_v11  ;;  %1119 = vmatprep.subr.bf16.mxu0 %v1199_v14 }
  0x19   :  { %1159 = vmatprep.subr.bf16.mxu1 %v1200_v15 }
  0x1b   :  { %1120 = vmatpush3.bf16.msra.mxu0 %v1199_v14 }
  0x1c   :  { %1160 = vmatpush3.bf16.msra.mxu1 %v1200_v15  ;;  %1121 = vmatprep.subr.bf16.mxu0 %v1201_v16 }
  0x1d   :  { %1161 = vmatprep.subr.bf16.mxu1 %v1202_v17 }
  0x1f   :  { %1122 = vmatpush3.bf16.msra.mxu0 %v1201_v16 }
  0x20   :  { %1162 = vmatpush3.bf16.msra.mxu1 %v1202_v17 }
  0x22   :  { %1124 = vmatmul.mubr.bf16.vlgmr.msra.gmra.mxu0 %v1205_v18 }
  0x23   :  { %1164 = vmatmul.mubr.bf16.vlgmr.msra.gmra.mxu1 %v1206_v19  ;;  %1127 = vmatprep.mubr.bf16.mxu0 %v1207_v20 }
  0x24   :  { %1167 = vmatprep.mubr.bf16.mxu1 %v1208_v21 }
  0x2a   :  { %1128 = vmatmul.mubr.bf16.gmra.mxu0 %v1209_v22 }
  0x2b   :  { %1168 = vmatmul.mubr.bf16.gmra.mxu1 %v1210_v23  ;;  %1131 = vmatprep.mubr.bf16.mxu0 %v1211_v24 }
  0x2c   :  { %1171 = vmatprep.mubr.bf16.mxu1 %v1212_v25 }
  0x32   :  { %1132 = vmatmul.mubr.bf16.gmra.mxu0 %v1213_v26 }
  0x33   :  { %1172 = vmatmul.mubr.bf16.gmra.mxu1 %v1214_v27  ;;  %1135 = vmatprep.mubr.bf16.mxu0 %v1215_v28 }
  0x34   :  { %1175 = vmatprep.mubr.bf16.mxu1 %v1216_v29 }
  0x3a   :  { %1136 = vmatmul.mubr.bf16.gmra.mxu0 %v1217_v30 }
  0x3b   :  { %1176 = vmatmul.mubr.bf16.gmra.mxu1 %v1218_v31  ;;  %1139 = vmatprep.mubr.bf16.mxu0 %v1219_v32 }
  0x3c   :  { %1179 = vmatprep.mubr.bf16.mxu1 %v1220_v33 }
  0x42   :  { %1140 = vmatmul.mubr.bf16.gmra.mxu0 %v1221_v34 }
  0x43   :  { %1180 = vmatmul.mubr.bf16.gmra.mxu1 %v1222_v35  ;;  %1143 = vmatprep.mubr.bf16.mxu0 %v1223_v36 }
  0x44   :  { %1183 = vmatprep.mubr.bf16.mxu1 %v1224_v37 }
  0x4a   :  { %1144 = vmatmul.mubr.bf16.gmra.mxu0 %v1225_v38 }
  0x4b   :  { %1184 = vmatmul.mubr.bf16.gmra.mxu1 %v1226_v39 }
  0xe2   :  { %v1125_v42 = vpop.f32.mrf.mxu0 }
  0xe3   :  { %v328_v44 = vmul.f32 %v1125_v42, %v1395_v40  ;;  %v1165_v45 = vpop.f32.mrf.mxu1 }
  0xe4   :  { %v679_v47 = vmul.f32 %v1165_v45, %v1400_v41  ;;  %v224_v48 = vpop.f32.mrf.mxu0 }
  0xe5   :  { %v359_v49 = vadd.f32 %v1405_v43, %v328_v44  ;;  %v326_v50 = vmul.f32 %v1395_v40, %v224_v48  ;;  %v575_v51 = vpop.f32.mrf.mxu1 }
  0xe6   :  { %v710_v52 = vadd.f32 %v1411_v46, %v679_v47  ;;  %v677_v53 = vmul.f32 %v1400_v41, %v575_v51  ;;  %v1126_v54 = vpop.f32.mrf.mxu0 }
  0xe7   :  { %v329_v55 = vmul.f32 %v1126_v54, %v1395_v40  ;;  %v1166_v56 = vpop.f32.mrf.mxu1  ;;  %v357_v57 = vadd.f32 %v1405_v43, %v326_v50 }
  0xe8   :  { %v708_v58 = vadd.f32 %v1411_v46, %v677_v53  ;;  %v680_v59 = vmul.f32 %v1166_v56, %v1400_v41  ;;  %v227_v60 = vpop.f32.mrf.mxu0  ;;  %v734_v61 = vadd.f32 %v710_v52, %v359_v49 }
  0xe9   :  { %v360_v62 = vadd.f32 %v1405_v43, %v329_v55  ;;  %v327_v63 = vmul.f32 %v1395_v40, %v227_v60  ;;  %v578_v0 = vpop.f32.mrf.mxu1 }
  0xea   :  { %v711_v1 = vadd.f32 %v1411_v46, %v680_v59  ;;  %v678_v2 = vmul.f32 %v1400_v41, %v578_v0  ;;  %v1129_v3 = vpop.f32.mrf.mxu0  ;;  %v732_v7 = vadd.f32 %v708_v58, %v357_v57  ;;  %v758_v12 = vmax.f32 %v734_v61, 0.0 }
  0xeb   :  { %v358_v4 = vadd.f32 %v1405_v43, %v327_v63  ;;  %v332_v5 = vmul.f32 %v1129_v3, %v1395_v40  ;;  %v1169_v6 = vpop.f32.mrf.mxu1 }
  0xec   :  { %v735_v8 = vadd.f32 %v711_v1, %v360_v62  ;;  %v709_v9 = vadd.f32 %v1411_v46, %v678_v2  ;;  %v683_v10 = vmul.f32 %v1169_v6, %v1400_v41  ;;  %v240_v11 = vpop.f32.mrf.mxu0  ;;  %v756_v24 = vmax.f32 %v732_v7, 0.0 }
  0xed   :  { %v363_v13 = vadd.f32 %v1405_v43, %v332_v5  ;;  %v330_v14 = vmul.f32 %v1395_v40, %v240_v11  ;;  %v591_v15 = vpop.f32.mrf.mxu1 }
  0xee   :  { %v759_v16 = vmax.f32 %v735_v8, 0.0  ;;  %v733_v17 = vadd.f32 %v709_v9, %v358_v4  ;;  %v714_v18 = vadd.f32 %v1411_v46, %v683_v10  ;;  %v681_v19 = vmul.f32 %v1400_v41, %v591_v15  ;;  %v1130_v20 = vpop.f32.mrf.mxu0 }
  0xef   :  { %v361_v21 = vadd.f32 %v1405_v43, %v330_v14  ;;  %v333_v22 = vmul.f32 %v1130_v20, %v1395_v40  ;;  %v1170_v23 = vpop.f32.mrf.mxu1 }
  0xf0   :  { %v1004_v25 = vpack.c.bf16 %v759_v16, %v758_v12  ;;  %v757_v26 = vmax.f32 %v733_v17, 0.0  ;;  %v712_v27 = vadd.f32 %v1411_v46, %v681_v19  ;;  %v243_v28 = vpop.f32.mrf.mxu0  ;;  %v684_v30 = vmul.f32 %v1170_v23, %v1400_v41 }
  0xf1   :  { %v364_v29 = vadd.f32 %v1405_v43, %v333_v22  ;;  %v331_v31 = vmul.f32 %v1395_v40, %v243_v28  ;;  %v594_v32 = vpop.f32.mrf.mxu1  ;;  %v738_v34 = vadd.f32 %v714_v18, %v363_v13 }
  0xf2   :  { %1056 = vst [vmem:[%s1552_s8 + $0x8] sm:$0xff] %v1004_v25   ;;  %v999_v33 = vpack.c.bf16 %v757_v26, %v756_v24  ;;  %v682_v35 = vmul.f32 %v1400_v41, %v594_v32  ;;  %v1133_v36 = vpop.f32.mrf.mxu0  ;;  %v736_v37 = vadd.f32 %v712_v27, %v361_v21  ;;  %v715_v38 = vadd.f32 %v1411_v46, %v684_v30 }
  0xf3   :  { %v362_v39 = vadd.f32 %v1405_v43, %v331_v31  ;;  %v336_v42 = vmul.f32 %v1133_v36, %v1395_v40  ;;  %v1173_v44 = vpop.f32.mrf.mxu1  ;;  %v762_v57 = vmax.f32 %v738_v34, 0.0 }
  0xf4   :  { %1000 = vst [vmem:[%s1552_s8] sm:$0xff] %v999_v33   ;;  %v713_v45 = vadd.f32 %v1411_v46, %v682_v35  ;;  %v687_v47 = vmul.f32 %v1173_v44, %v1400_v41  ;;  %v256_v48 = vpop.f32.mrf.mxu0  ;;  %v739_v49 = vadd.f32 %v715_v38, %v364_v29  ;;  %v760_v58 = vmax.f32 %v736_v37, 0.0 }
  0xf5   :  { %v367_v50 = vadd.f32 %v1405_v43, %v336_v42  ;;  %v334_v51 = vmul.f32 %v1395_v40, %v256_v48  ;;  %v607_v52 = vpop.f32.mrf.mxu1 }
  0xf6   :  { %v737_v53 = vadd.f32 %v713_v45, %v362_v39  ;;  %v718_v54 = vadd.f32 %v1411_v46, %v687_v47  ;;  %v685_v55 = vmul.f32 %v1400_v41, %v607_v52  ;;  %v1134_v56 = vpop.f32.mrf.mxu0  ;;  %v763_v59 = vmax.f32 %v739_v49, 0.0 }
  0xf7   :  { %v337_v60 = vmul.f32 %v1134_v56, %v1395_v40  ;;  %v1174_v61 = vpop.f32.mrf.mxu1  ;;  %v365_v0 = vadd.f32 %v1405_v43, %v334_v51 }
  0xf8   :  { %v761_v62 = vmax.f32 %v737_v53, 0.0  ;;  %v742_v63 = vadd.f32 %v718_v54, %v367_v50  ;;  %v688_v1 = vmul.f32 %v1174_v61, %v1400_v41  ;;  %v259_v2 = vpop.f32.mrf.mxu0  ;;  %v1014_v3 = vpack.c.bf16 %v763_v59, %v762_v57 }
  0xf9   :  { %v716_v4 = vadd.f32 %v1411_v46, %v685_v55  ;;  %v368_v5 = vadd.f32 %v1405_v43, %v337_v60  ;;  %v335_v6 = vmul.f32 %v1395_v40, %v259_v2  ;;  %v610_v7 = vpop.f32.mrf.mxu1 }
  0xfa   :  { %v1009_v8 = vpack.c.bf16 %v761_v62, %v760_v58  ;;  %v719_v9 = vadd.f32 %v1411_v46, %v688_v1  ;;  %v1137_v10 = vpop.f32.mrf.mxu0  ;;  %1058 = vst [vmem:[%s1552_s8 + $0x18] sm:$0xff] %v1014_v3   ;;  %v686_v12 = vmul.f32 %v1400_v41, %v610_v7  ;;  %v766_v18 = vmax.f32 %v742_v63, 0.0 }
  0xfb   :  { %v366_v11 = vadd.f32 %v1405_v43, %v335_v6  ;;  %v340_v13 = vmul.f32 %v1137_v10, %v1395_v40  ;;  %v1177_v14 = vpop.f32.mrf.mxu1  ;;  %v740_v19 = vadd.f32 %v716_v4, %v365_v0 }
  0xfc   :  { %1057 = vst [vmem:[%s1552_s8 + $0x10] sm:$0xff] %v1009_v8   ;;  %v743_v15 = vadd.f32 %v719_v9, %v368_v5  ;;  %v691_v16 = vmul.f32 %v1177_v14, %v1400_v41  ;;  %v272_v17 = vpop.f32.mrf.mxu0  ;;  %v717_v20 = vadd.f32 %v1411_v46, %v686_v12 }
  0xfd   :  { %v338_v21 = vmul.f32 %v1395_v40, %v272_v17  ;;  %v623_v22 = vpop.f32.mrf.mxu1  ;;  %v371_v24 = vadd.f32 %v1405_v43, %v340_v13  ;;  %v764_v36 = vmax.f32 %v740_v19, 0.0 }
  0xfe   :  { %v767_v23 = vmax.f32 %v743_v15, 0.0  ;;  %v722_v25 = vadd.f32 %v1411_v46, %v691_v16  ;;  %v689_v26 = vmul.f32 %v1400_v41, %v623_v22  ;;  %v1138_v27 = vpop.f32.mrf.mxu0  ;;  %v741_v28 = vadd.f32 %v717_v20, %v366_v11 }
  0xff   :  { %v369_v29 = vadd.f32 %v1405_v43, %v338_v21  ;;  %v341_v30 = vmul.f32 %v1138_v27, %v1395_v40  ;;  %v1178_v31 = vpop.f32.mrf.mxu1 }
 0x100   :  { %v1024_v32 = vpack.c.bf16 %v767_v23, %v766_v18  ;;  %v720_v33 = vadd.f32 %v1411_v46, %v689_v26  ;;  %v692_v34 = vmul.f32 %v1178_v31, %v1400_v41  ;;  %v275_v35 = vpop.f32.mrf.mxu0  ;;  %v765_v37 = vmax.f32 %v741_v28, 0.0 }
 0x101   :  { %v372_v38 = vadd.f32 %v1405_v43, %v341_v30  ;;  %v339_v39 = vmul.f32 %v1395_v40, %v275_v35  ;;  %v626_v42 = vpop.f32.mrf.mxu1  ;;  %v746_v44 = vadd.f32 %v722_v25, %v371_v24 }
 0x102   :  { %1060 = vst [vmem:[%s1552_s8 + $0x28] sm:$0xff] %v1024_v32   ;;  %v723_v45 = vadd.f32 %v1411_v46, %v692_v34  ;;  %v690_v47 = vmul.f32 %v1400_v41, %v626_v42  ;;  %v1141_v48 = vpop.f32.mrf.mxu0  ;;  %v1019_v49 = vpack.c.bf16 %v765_v37, %v764_v36  ;;  %v744_v50 = vadd.f32 %v720_v33, %v369_v29 }
 0x103   :  { %v370_v51 = vadd.f32 %v1405_v43, %v339_v39  ;;  %v344_v52 = vmul.f32 %v1141_v48, %v1395_v40  ;;  %v1181_v53 = vpop.f32.mrf.mxu1  ;;  %v770_v60 = vmax.f32 %v746_v44, 0.0 }
 0x104   :  { %v747_v54 = vadd.f32 %v723_v45, %v372_v38  ;;  %v721_v55 = vadd.f32 %v1411_v46, %v690_v47  ;;  %v695_v56 = vmul.f32 %v1181_v53, %v1400_v41  ;;  %v288_v57 = vpop.f32.mrf.mxu0  ;;  %1059 = vst [vmem:[%s1552_s8 + $0x20] sm:$0xff] %v1019_v49   ;;  %v768_v1 = vmax.f32 %v744_v50, 0.0 }
 0x105   :  { %v342_v58 = vmul.f32 %v1395_v40, %v288_v57  ;;  %v639_v59 = vpop.f32.mrf.mxu1  ;;  %v375_v2 = vadd.f32 %v1405_v43, %v344_v52 }
 0x106   :  { %v771_v61 = vmax.f32 %v747_v54, 0.0  ;;  %v745_v62 = vadd.f32 %v721_v55, %v370_v51  ;;  %v693_v63 = vmul.f32 %v1400_v41, %v639_v59  ;;  %v1142_v0 = vpop.f32.mrf.mxu0  ;;  %v726_v3 = vadd.f32 %v1411_v46, %v695_v56 }
 0x107   :  { %v345_v4 = vmul.f32 %v1142_v0, %v1395_v40  ;;  %v1182_v5 = vpop.f32.mrf.mxu1  ;;  %v373_v8 = vadd.f32 %v1405_v43, %v342_v58 }
 0x108   :  { %v1034_v6 = vpack.c.bf16 %v771_v61, %v770_v60  ;;  %v769_v7 = vmax.f32 %v745_v62, 0.0  ;;  %v724_v9 = vadd.f32 %v1411_v46, %v693_v63  ;;  %v291_v10 = vpop.f32.mrf.mxu0  ;;  %v696_v12 = vmul.f32 %v1182_v5, %v1400_v41 }
 0x109   :  { %v376_v11 = vadd.f32 %v1405_v43, %v345_v4  ;;  %v343_v13 = vmul.f32 %v1395_v40, %v291_v10  ;;  %v642_v14 = vpop.f32.mrf.mxu1  ;;  %v750_v18 = vadd.f32 %v726_v3, %v375_v2 }
 0x10a   :  { %1062 = vst [vmem:[%s1552_s8 + $0x38] sm:$0xff] %v1034_v6   ;;  %v1029_v15 = vpack.c.bf16 %v769_v7, %v768_v1  ;;  %v694_v16 = vmul.f32 %v1400_v41, %v642_v14  ;;  %v1145_v17 = vpop.f32.mrf.mxu0  ;;  %v727_v19 = vadd.f32 %v1411_v46, %v696_v12  ;;  %v748_v23 = vadd.f32 %v724_v9, %v373_v8 }
 0x10b   :  { %v374_v20 = vadd.f32 %v1405_v43, %v343_v13  ;;  %v348_v21 = vmul.f32 %v1145_v17, %v1395_v40  ;;  %v1185_v22 = vpop.f32.mrf.mxu1  ;;  %v774_v35 = vmax.f32 %v750_v18, 0.0 }
 0x10c   :  { %1061 = vst [vmem:[%s1552_s8 + $0x30] sm:$0xff] %v1029_v15   ;;  %v725_v24 = vadd.f32 %v1411_v46, %v694_v16  ;;  %v699_v25 = vmul.f32 %v1185_v22, %v1400_v41  ;;  %v304_v26 = vpop.f32.mrf.mxu0  ;;  %v751_v27 = vadd.f32 %v727_v19, %v376_v11  ;;  %v772_v39 = vmax.f32 %v748_v23, 0.0 }
 0x10d   :  { %v346_v28 = vmul.f32 %v1395_v40, %v304_v26  ;;  %v655_v29 = vpop.f32.mrf.mxu1  ;;  %v379_v31 = vadd.f32 %v1405_v43, %v348_v21 }
 0x10e   :  { %v749_v30 = vadd.f32 %v725_v24, %v374_v20  ;;  %v730_v32 = vadd.f32 %v1411_v46, %v699_v25  ;;  %v697_v33 = vmul.f32 %v1400_v41, %v655_v29  ;;  %v1146_v34 = vpop.f32.mrf.mxu0  ;;  %v775_v36 = vmax.f32 %v751_v27, 0.0 }
 0x10f   :  { %v349_v37 = vmul.f32 %v1146_v34, %v1395_v40  ;;  %v1186_v38 = vpop.f32.mrf.mxu1  ;;  %v377_v44 = vadd.f32 %v1405_v43, %v346_v28 }
 0x110   :  { %v773_v42 = vmax.f32 %v749_v30, 0.0  ;;  %v700_v45 = vmul.f32 %v1186_v38, %v1400_v41  ;;  %v307_v47 = vpop.f32.mrf.mxu0  ;;  %v1044_v48 = vpack.c.bf16 %v775_v36, %v774_v35  ;;  %v728_v49 = vadd.f32 %v1411_v46, %v697_v33 }
 0x111   :  { %v380_v50 = vadd.f32 %v1405_v43, %v349_v37  ;;  %v347_v51 = vmul.f32 %v1395_v40, %v307_v47  ;;  %v658_v52 = vpop.f32.mrf.mxu1  ;;  %v754_v54 = vadd.f32 %v730_v32, %v379_v31 }
 0x112   :  { %v1039_v53 = vpack.c.bf16 %v773_v42, %v772_v39  ;;  %v731_v55 = vadd.f32 %v1411_v46, %v700_v45  ;;  %1064 = vst [vmem:[%s1552_s8 + $0x48] sm:$0xff] %v1044_v48   ;;  %v698_v57 = vmul.f32 %v1400_v41, %v658_v52  ;;  %v752_v59 = vadd.f32 %v728_v49, %v377_v44 }
 0x113   :  { %v378_v56 = vadd.f32 %v1405_v43, %v347_v51  ;;  %v778_v60 = vmax.f32 %v754_v54, 0.0 }
 0x114   :  { %1063 = vst [vmem:[%s1552_s8 + $0x40] sm:$0xff] %v1039_v53   ;;  %v755_v58 = vadd.f32 %v731_v55, %v380_v50  ;;  %v729_v40 = vadd.f32 %v1411_v46, %v698_v57  ;;  %v776_v0 = vmax.f32 %v752_v59, 0.0 }
 0x116   :  { %v779_v61 = vmax.f32 %v755_v58, 0.0  ;;  %v753_v62 = vadd.f32 %v729_v40, %v378_v56 }
 0x118   :  { %v1054_v63 = vpack.c.bf16 %v779_v61, %v778_v60  ;;  %v777_v1 = vmax.f32 %v753_v62, 0.0 }
 0x11a   :  { %1066 = vst [vmem:[%s1552_s8 + $0x58] sm:$0xff] %v1054_v63   ;;  %v1049_v43 = vpack.c.bf16 %v777_v1, %v776_v0 }
 0x11c   :  { %1065 = vst [vmem:[%s1552_s8 + $0x50] sm:$0xff] %v1049_v43  }

// kernel: bottleneck3d_forward.4
= control target key start
LH: loop header
LB: loop body
LE: loop exit
PB: predicated region body
PF: predicated region fallthrough
CT: control target
= control target key end

     0   :  { %s2531_s15 = smov 0   ;;  %s2533_s16 = smov 0   ;;  %s2735_s0 = inlined_call_operand.vmem [shape: bf16[12,4,30,128], index: 0, kind: input, shape index: {}]   ;;  %s2736_s1 = inlined_call_operand.vmem [shape: bf16[27,128,128], index: 1, kind: input, shape index: {}]   ;;  %s2737_s2 = inlined_call_operand.vmem [shape: f32[1,128], index: 2, kind: input, shape index: {}]   ;;  %s2738_s3 = inlined_call_operand.vmem [shape: f32[1,128], index: 3, kind: input, shape index: {}]   ;;  %s2739_s4 = inlined_call_operand.vmem [shape: bf16[2,4,24,128], index: 4, kind: output, shape index: {}]  }
   0x1   :  { %s2535_s17 = smov 0   ;;  %s2537_s18 = smov 0  }
   0x2   :  { %s2539_s19 = smov 0   ;;  %s2541_s20 = smov 0  }
   0x3   :  { %s2543_s21 = smov 0  }
   0x4 LB: > { %s26_s22 = sadd.s32 1, %s2491_s18  ;;  %s29_s23 = sadd.s32 1, %s2495_s19  ;;  %s2503_s21 = sphi %s2543_s21, %s14_s21   ;;  %s2499_s20 = sphi %s2541_s20, %s2745_s20   ;;  %s2495_s19 = sphi %s2539_s19, %s2744_s19   ;;  %s2491_s18 = sphi %s2537_s18, %s2743_s18   ;;  %s2487_s17 = sphi %s2535_s17, %s2742_s17   ;;  %s2483_s16 = sphi %s2533_s16, %s2741_s16   ;;  %s2479_s15 = sphi %s2531_s15, %s2740_s15  }
   0x5   : > { %p27_p0 = scmp.ge.s32.totalorder %s26_s22, 3  ;;  %p1762_p1 = scmp.ge.s32.totalorder %s2503_s21, 1 }
   0x6   : > { %p195_p2 = scmp.lt.s32.totalorder %s2503_s21, 25  ;;  %s33_s24 = sadd.s32 1, %s2499_s20 }
   0x7   : > { %s2747_s22 = smov (%p27_p0, %s26_s22), 0  ;;  %s2749_s23 = smov (!%p27_p0, %s29_s23), %s2495_s19 }
   0x8   : > { %p196_p3 = pnand %p1762_p1, %p195_p2  ;;  %p31_p4 = scmp.ge.s32.totalorder %s2749_s23, 4 }
   0x9   : > { %s228_s25 = smul.u32 (!%p196_p3), 6, %s2487_s17  ;;  %p239_p6 = scmp.lt.s32.totalorder (!%p196_p3), %s2487_s17, 1 }
   0xa   : > { %s2751_s23 = smov (%p31_p4, %s2749_s23), 0  ;;  %s2753_s24 = smov (!%p31_p4, %s33_s24), %s2499_s20 }
   0xb   : > { %p35_p5 = scmp.ge.s32.totalorder %s2753_s24, 2  ;;  %199 = sbr.rel (%p196_p3) target bundleno = 410 (0x19a), region = 36 }
   0xc   : > { %s229_s26 = sadd.s32 (!%p196_p3), %s2483_s16, %s228_s25  ;;  %p241_p7 = scmp.lt.s32.totalorder (!%p196_p3), %s2483_s16, 3 }
   0xd   : > { %s2755_s24 = smov (%p35_p5, %s2753_s24), 0  ;;  %s230_s27 = sadd.s32 (!%p196_p3), %s2479_s15, %s229_s26 }
   0xe   : > { %p231_p8 = scmp.lt.s32.totalorder (!%p196_p3), %s230_s27, 11  ;;  %p1766_p9 = scmp.ne.s32.totalorder (!%p196_p3), %s2479_s15, 0 }
  0x10   : > { %s2757_s17 = smov (!%p239_p6, %s2487_s17), 1  ;;  %s2759_s27 = smov (!%p231_p8, %s230_s27), 11 }
  0x11   : > { %s2761_s16 = smov (!%p241_p7, %s2483_s16), 3  ;;  %s2020_s28 = sshll.u32 %s2759_s27, 6 }
  0x12   : > { %s2301_s29 = smul.u32 12, %s2757_s17  ;;  %s2579_s6 = scalar_lea.vmem %s2735_s0, %s2020_s28 }
  0x13   : > { %s2300_s7 = smul.u32 3, %s2761_s16 }
  0x14   : > { %252 = sbr.rel (%p1766_p9) target bundleno = 28 (0x1c), region = 40 }
  0x15   : > { %s245_s8 = sadd.s32 %s2301_s29, %s2300_s7 }
  0x16   : > { %s1765_s9 = sshll.u32 %s245_s8, 2 }
  0x17   : > { %s2584_s12 = scalar_lea.vmem %s2739_s4, %s1765_s9 }
  0x19   : > { %v2505_v0 = vmov 0.0  }
  0x1a   : > { %253 = vst [vmem:[#allocation2 + $0x10] sm:$0xff] %v2505_v0  ;;  %254 = vst [vmem:[#allocation2] sm:$0xff] %v2505_v0 }
  0x1b   : > { %255 = vst [vmem:[#allocation2 + $0x8] sm:$0xff] %v2505_v0 }
  0x1c PF: > { %s2021_s13 = smul.u32 576, %s2479_s15  ;;  %v2373_v1 = vld [vmem:[%s2579_s6] sm:$0xff]   ;;  %v2380_v2 = vld [vmem:[%s2579_s6 + $0x10] sm:$0xff]   ;;  %v2374_v20 = vld [vmem:[%s2579_s6 + $0x8] ss:$0 sps:$4 sm:$0xff]   ;;  %vm1478_vm2 = vcmask 1044480  }
  0x1d   : > { %2136 = vmatprep.mubr.bf16.mxu0 %v2373_v1  ;;  %2156 = vmatprep.mubr.bf16.mxu1 %v2380_v2  ;;  %v2393_v23 = vld [vmem:[%s2579_s6] sm:$0xff]   ;;  %v2381_v24 = vld [vmem:[%s2579_s6 + $0x18] ss:$0 sps:$4 sm:$0xff]   ;;  %v2618_v25 = vld [vmem:[%s2579_s6 + $0x8] sm:$0x1f]   ;;  %p2012_p10 = scmp.ne.s32.totalorder %s2479_s15, 2 }
  0x1e   : > { %s2592_s17 = scalar_lea.vmem %s2736_s1, %s2021_s13  ;;  %vm570_vm0 = vsmask.f32 7424  ;;  %v572_v26 = vshrl.u32 %v2393_v23, 16  ;;  %v574_v27 = vshll.u32 %v2393_v23, 16  ;;  %v579_v28 = vshll.u32 %v2618_v25, 16  ;;  %v2400_v34 = vld [vmem:[%s2579_s6 + $0x20] sm:$0xff]  }
  0x1f   : > { %v2359_v3 = vld [vmem:[%s2592_s17 + $0x38] sm:$0xff]   ;;  %v2360_v4 = vld [vmem:[%s2592_s17 + $0x30] sm:$0xff]   ;;  %v2361_v6 = vld [vmem:[%s2592_s17 + $0x28] sm:$0xff]   ;;  %v583_v47 = vshrl.u32 %v2618_v25, 16  ;;  %vm1161_vm1 = vsmask.f32 5376 }
  0x20   : > { %2120 = vmatprep.subr.bf16.mxu0 %v2359_v3  ;;  %v2362_v5 = vld [vmem:[%s2592_s17 + $0x78] sm:$0xff]   ;;  %v2364_v7 = vld [vmem:[%s2592_s17 + $0x70] sm:$0xff]   ;;  %v2366_v8 = vld [vmem:[%s2592_s17 + $0x68] sm:$0xff]   ;;  %v576_v30 = vrot.slane %v574_v27, 1  ;;  %v581_v32 = vrot.slane %v579_v28, 1 }
  0x21   : > { %2121 = vmatpush3.bf16.msra.mxu0 %v2359_v3  ;;  %2140 = vmatprep.subr.bf16.mxu1 %v2362_v5  ;;  %v2363_v9 = vld [vmem:[%s2592_s17 + $0x20] sm:$0xff]   ;;  %v2365_v11 = vld [vmem:[%s2592_s17 + $0x18] sm:$0xff]   ;;  %v2367_v13 = vld [vmem:[%s2592_s17 + $0x10] sm:$0xff]  }
  0x22   : > { %2122 = vmatprep.subr.bf16.mxu0 %v2360_v4  ;;  %2141 = vmatpush3.bf16.msra.mxu1 %v2362_v5  ;;  %v2368_v10 = vld [vmem:[%s2592_s17 + $0x60] sm:$0xff]   ;;  %v2370_v12 = vld [vmem:[%s2592_s17 + $0x58] sm:$0xff]   ;;  %v2372_v14 = vld [vmem:[%s2592_s17 + $0x50] sm:$0xff]   ;;  %v577_v33 = vor.u32 %v576_v30, %v572_v26  ;;  %v585_v54 = vor.u32 %v583_v47, %v581_v32 }
  0x23   : > { %2142 = vmatprep.subr.bf16.mxu1 %v2364_v7  ;;  %v2369_v15 = vld [vmem:[%s2592_s17 + $0x8] sm:$0xff]   ;;  %v2371_v17 = vld [vmem:[%s2592_s17] sm:$0xff]   ;;  %v2375_v19 = vld [vmem:[%s2592_s17 + $0xb8] sm:$0xff]  }
  0x24   : > { %v2376_v16 = vld [vmem:[%s2592_s17 + $0x48] sm:$0xff]   ;;  %v2378_v18 = vld [vmem:[%s2592_s17 + $0x40] sm:$0xff]   ;;  %v2377_v21 = vld [vmem:[%s2592_s17 + $0xb0] sm:$0xff]   ;;  %v582_v36 = vsel %vm570_vm0, %v577_v33, %v581_v32 }
  0x25   : > { %2123 = vmatpush3.bf16.msra.mxu0 %v2360_v4  ;;  %v2382_v22 = vld [vmem:[%s2592_s17 + $0xf8] sm:$0xff]   ;;  %v2384_v29 = vld [vmem:[%s2592_s17 + $0xf0] sm:$0xff]   ;;  %v2379_v31 = vld [vmem:[%s2592_s17 + $0xa8] sm:$0xff]  }
  0x26   : > { %2124 = vmatprep.subr.bf16.mxu0 %v2361_v6  ;;  %2143 = vmatpush3.bf16.msra.mxu1 %v2364_v7  ;;  %v2386_v35 = vld [vmem:[%s2592_s17 + $0xe8] sm:$0xff]   ;;  %v2383_v37 = vld [vmem:[%s2592_s17 + $0xa0] sm:$0xff]   ;;  %v2385_v39 = vld [vmem:[%s2592_s17 + $0x98] sm:$0xff]  }
  0x27   : > { %2144 = vmatprep.subr.bf16.mxu1 %v2366_v8  ;;  %v2388_v38 = vld [vmem:[%s2592_s17 + $0xe0] sm:$0xff]   ;;  %v2390_v40 = vld [vmem:[%s2592_s17 + $0xd8] sm:$0xff]   ;;  %v2387_v41 = vld [vmem:[%s2592_s17 + $0x90] sm:$0xff]  }
  0x28   : > { %v2392_v42 = vld [vmem:[%s2592_s17 + $0xd0] sm:$0xff]   ;;  %v2389_v43 = vld [vmem:[%s2592_s17 + $0x88] sm:$0xff]   ;;  %v2391_v45 = vld [vmem:[%s2592_s17 + $0x80] sm:$0xff]  }
  0x29   : > { %2125 = vmatpush3.bf16.msra.mxu0 %v2361_v6  ;;  %v2396_v44 = vld [vmem:[%s2592_s17 + $0xc8] sm:$0xff]   ;;  %v2398_v46 = vld [vmem:[%s2592_s17 + $0xc0] sm:$0xff]   ;;  %v2395_v50 = vld [vmem:[%s2592_s17 + $0x138] sm:$0xff]  }
  0x2a   : > { %2126 = vmatprep.subr.bf16.mxu0 %v2363_v9  ;;  %2145 = vmatpush3.bf16.msra.mxu1 %v2366_v8  ;;  %v2420_v48 = vld [vmem:[%s2579_s6 + $0x20] sm:$0xff]   ;;  %v2639_v49 = vld [vmem:[%s2579_s6 + $0x28] sm:$0x1f]   ;;  %v2397_v55 = vld [vmem:[%s2592_s17 + $0x130] sm:$0xff]  }
  0x2b   : > { %2146 = vmatprep.subr.bf16.mxu1 %v2368_v10  ;;  %v1006_v51 = vshrl.u32 %v2420_v48, 16  ;;  %v1008_v52 = vshll.u32 %v2420_v48, 16  ;;  %v1013_v53 = vshll.u32 %v2639_v49, 16  ;;  %v2402_v57 = vld [vmem:[%s2592_s17 + $0x178] sm:$0xff]   ;;  %v2413_v59 = vld [vmem:[%s2579_s6 + $0x30] sm:$0xff]   ;;  %v2399_v0 = vld [vmem:[%s2592_s17 + $0x128] sm:$0xff]  }
  0x2c   : > { %v2401_v61 = vld [vmem:[%s2579_s6 + $0x28] ss:$0 sps:$4 sm:$0xff]   ;;  %v2404_v62 = vld [vmem:[%s2592_s17 + $0x170] sm:$0xff]   ;;  %v2403_v2 = vld [vmem:[%s2592_s17 + $0x120] sm:$0xff]   ;;  %v1017_v33 = vshrl.u32 %v2639_v49, 16 }
  0x2d   : > { %2127 = vmatpush3.bf16.msra.mxu0 %v2363_v9  ;;  %v1010_v56 = vrot.slane %v1008_v52, 1  ;;  %v2645_v58 = vrot.slane %v1013_v53, 1  ;;  %v2406_v1 = vld [vmem:[%s2592_s17 + $0x168] sm:$0xff]   ;;  %v2408_v3 = vld [vmem:[%s2592_s17 + $0x160] sm:$0xff]   ;;  %v2405_v4 = vld [vmem:[%s2592_s17 + $0x118] sm:$0xff]  }
  0x2e   : > { %2128 = vmatprep.subr.bf16.mxu0 %v2365_v11  ;;  %2147 = vmatpush3.bf16.msra.mxu1 %v2368_v10  ;;  %v2407_v5 = vld [vmem:[%s2592_s17 + $0x110] sm:$0xff]   ;;  %v2410_v6 = vld [vmem:[%s2592_s17 + $0x158] sm:$0xff]   ;;  %v2433_v7 = vld [vmem:[%s2579_s6] sm:$0xfc]  }
  0x2f   : > { %2148 = vmatprep.subr.bf16.mxu1 %v2370_v12  ;;  %v1011_v60 = vor.u32 %v1010_v56, %v1006_v51  ;;  %v2434_v8 = vld [vmem:[%s2579_s6 + $0x8] sm:$0x7f]   ;;  %v2440_v9 = vld [vmem:[%s2579_s6 + $0x10] sm:$0xfc]   ;;  %v2418_v27 = vld [vmem:[%s2592_s17 + $0x140] sm:$0xff]  }
  0x30   : > { %v2409_v10 = vld [vmem:[%s2592_s17 + $0x108] sm:$0xff]   ;;  %v2415_v32 = vld [vmem:[%s2592_s17 + $0x1b8] sm:$0xff]   ;;  %v2423_v47 = vld [vmem:[%s2592_s17 + $0x1a0] sm:$0xff]  }
  0x31   : > { %2129 = vmatpush3.bf16.msra.mxu0 %v2365_v11  ;;  %v1016_v63 = vsel %vm570_vm0, %v1011_v60, %v2645_v58  ;;  %v2441_v11 = vld [vmem:[%s2579_s6 + $0x18] sm:$0x7f]   ;;  %v2428_v48 = vld [vmem:[%s2592_s17 + $0x1e0] sm:$0xff]   ;;  %v2427_v51 = vld [vmem:[%s2592_s17 + $0x190] sm:$0xff]  }
  0x32   : > { %2130 = vmatprep.subr.bf16.mxu0 %v2367_v13  ;;  %2149 = vmatpush3.bf16.msra.mxu1 %v2370_v12  ;;  %v2412_v12 = vld [vmem:[%s2592_s17 + $0x150] sm:$0xff]   ;;  %v2425_v49 = vld [vmem:[%s2592_s17 + $0x198] sm:$0xff]   ;;  %v2429_v53 = vld [vmem:[%s2592_s17 + $0x188] sm:$0xff]  }
  0x33   : > { %2150 = vmatprep.subr.bf16.mxu1 %v2372_v14  ;;  %v2432_v52 = vld [vmem:[%s2592_s17 + $0x1d0] sm:$0xff]   ;;  %v2447_v56 = vld [vmem:[%s2579_s6] sm:$0xf8]  }
  0x34   : > { %v1479_v60 = vrot.slane %v2447_v56, 3 }
  0x35   : > { %2131 = vmatpush3.bf16.msra.mxu0 %v2367_v13  ;;  %v1163_v13 = vshrl.u32 %v2433_v7, 16 }
  0x36   : > { %2132 = vmatprep.subr.bf16.mxu0 %v2369_v15  ;;  %2151 = vmatpush3.bf16.msra.mxu1 %v2372_v14  ;;  %v1166_v14 = vshll.u32 %v2433_v7, 16 }
  0x37   : > { %2152 = vmatprep.subr.bf16.mxu1 %v2376_v16  ;;  %v1165_v23 = vrot.slane %v1163_v13, 2 }
  0x39   : > { %2133 = vmatpush3.bf16.msra.mxu0 %v2369_v15  ;;  %v1171_v15 = vshrl.u32 %v2434_v8, 16 }
  0x3a   : > { %2134 = vmatprep.subr.bf16.mxu0 %v2371_v17  ;;  %2153 = vmatpush3.bf16.msra.mxu1 %v2376_v16  ;;  %v1174_v16 = vshll.u32 %v2434_v8, 16  ;;  %v279_v8 = vld [vmem:[#allocation2 + $0x10] sm:$0xff] }
  0x3b   : > { %2154 = vmatprep.subr.bf16.mxu1 %v2378_v18  ;;  %v1173_v25 = vrot.slane %v1171_v15, 2 }
  0x3c   : > { %v1176_v26 = vrot.slane %v1174_v16, 3 }
  0x3d   : > { %2135 = vmatpush3.bf16.msra.mxu0 %v2371_v17  ;;  %v2416_v17 = vld [vmem:[%s2592_s17 + $0x148] sm:$0xff]  }
  0x3e   : > { %2160 = vmatprep.subr.bf16.mxu0 %v2375_v19  ;;  %2155 = vmatpush3.bf16.msra.mxu1 %v2378_v18  ;;  %v1321_v18 = vshrl.u32 %v2440_v9, 16 }
  0x3f   : > { %2180 = vmatprep.subr.bf16.mxu1 %v2382_v22 }
  0x40   : > { %2137 = vmatmul.mubr.bf16.vlgmr.msra.gmra.mxu0 %v2374_v20  ;;  %v1329_v20 = vshrl.u32 %v2441_v11, 16  ;;  %v1323_v28 = vrot.slane %v1321_v18, 2 }
  0x41   : > { %2161 = vmatpush3.bf16.msra.mxu0 %v2375_v19  ;;  %2157 = vmatmul.mubr.bf16.vlgmr.msra.gmra.mxu1 %v2381_v24  ;;  %v1324_v19 = vshll.u32 %v2440_v9, 16  ;;  %v1168_v24 = vrot.slane %v1166_v14, 3  ;;  %v280_v14 = vld [vmem:[#allocation2] sm:$0xff] }
  0x42   : > { %2162 = vmatprep.subr.bf16.mxu0 %v2377_v21  ;;  %2181 = vmatpush3.bf16.msra.mxu1 %v2382_v22  ;;  %v2411_v22 = vld [vmem:[%s2592_s17 + $0x100] sm:$0xff]   ;;  %v1331_v30 = vrot.slane %v1329_v20, 2 }
  0x43   : > { %2182 = vmatprep.subr.bf16.mxu1 %v2384_v29  ;;  %2176 = vmatprep.mubr.bf16.mxu0 %v582_v36  ;;  %v2414_v36 = vld [vmem:[%s2579_s6 + $0x38] ss:$0 sps:$4 sm:$0xff]  }
  0x44   : > { %2196 = vmatprep.mubr.bf16.mxu1 %v2400_v34  ;;  %v1169_v34 = vor.u32 %v1168_v24, %v1165_v23 }
  0x45   : > { %2163 = vmatpush3.bf16.msra.mxu0 %v2377_v21  ;;  %v1332_v21 = vshll.u32 %v2441_v11, 16 }
  0x46   : > { %2164 = vmatprep.subr.bf16.mxu0 %v2379_v31  ;;  %2183 = vmatpush3.bf16.msra.mxu1 %v2384_v29  ;;  %v1326_v29 = vrot.slane %v1324_v19, 3 }
  0x47   : > { %2184 = vmatprep.subr.bf16.mxu1 %v2386_v35 }
  0x49   : > { %2165 = vmatpush3.bf16.msra.mxu0 %v2379_v31  ;;  %v1334_v31 = vrot.slane %v1332_v21, 3 }
  0x4a   : > { %2166 = vmatprep.subr.bf16.mxu0 %v2383_v37  ;;  %2185 = vmatpush3.bf16.msra.mxu1 %v2386_v35  ;;  %v2670_v35 = vor.u32 %v1176_v26, %v1173_v25 }
  0x4b   : > { %2186 = vmatprep.subr.bf16.mxu1 %v2388_v38 }
  0x4d   : > { %2167 = vmatpush3.bf16.msra.mxu0 %v2383_v37  ;;  %v2422_v37 = vld [vmem:[%s2592_s17 + $0x1f8] sm:$0xff]  }
  0x4e   : > { %2168 = vmatprep.subr.bf16.mxu0 %v2385_v39  ;;  %2187 = vmatpush3.bf16.msra.mxu1 %v2388_v38  ;;  %v1327_v38 = vor.u32 %v1326_v29, %v1323_v28 }
  0x4f   : > { %2188 = vmatprep.subr.bf16.mxu1 %v2390_v40 }
  0x51   : > { %2169 = vmatpush3.bf16.msra.mxu0 %v2385_v39  ;;  %v2674_v39 = vor.u32 %v1334_v31, %v1331_v30 }
  0x52   : > { %2170 = vmatprep.subr.bf16.mxu0 %v2387_v41  ;;  %2189 = vmatpush3.bf16.msra.mxu1 %v2390_v40  ;;  %v2417_v40 = vld [vmem:[%s2592_s17 + $0x1b0] sm:$0xff]  }
  0x53   : > { %2190 = vmatprep.subr.bf16.mxu1 %v2392_v42 }
  0x55   : > { %2171 = vmatpush3.bf16.msra.mxu0 %v2387_v41  ;;  %v1019_v41 = vor.u32 %v1017_v33, %v2645_v58  ;;  %v2438_v58 = vld [vmem:[%s2592_s17 + $0x1c0] sm:$0xff]  }
  0x56   : > { %2172 = vmatprep.subr.bf16.mxu0 %v2389_v43  ;;  %2191 = vmatpush3.bf16.msra.mxu1 %v2392_v42  ;;  %v1178_v42 = vsel %vm1161_vm1, %v1169_v34, %v2670_v35 }
  0x57   : > { %2192 = vmatprep.subr.bf16.mxu1 %v2396_v44 }
  0x59   : > { %2173 = vmatpush3.bf16.msra.mxu0 %v2389_v43  ;;  %v2424_v43 = vld [vmem:[%s2592_s17 + $0x1f0] sm:$0xff]  }
  0x5a   : > { %2174 = vmatprep.subr.bf16.mxu0 %v2391_v45  ;;  %2193 = vmatpush3.bf16.msra.mxu1 %v2396_v44  ;;  %v1336_v44 = vsel %vm1161_vm1, %v1327_v38, %v2674_v39 }
  0x5b   : > { %2194 = vmatprep.subr.bf16.mxu1 %v2398_v46 }
  0x5d   : > { %2175 = vmatpush3.bf16.msra.mxu0 %v2391_v45  ;;  %v2419_v45 = vld [vmem:[%s2592_s17 + $0x1a8] sm:$0xff]  }
  0x5e   : > { %2200 = vmatprep.subr.bf16.mxu0 %v2395_v50  ;;  %2195 = vmatpush3.bf16.msra.mxu1 %v2398_v46  ;;  %v2426_v46 = vld [vmem:[%s2592_s17 + $0x1e8] sm:$0xff]  }
  0x5f   : > { %2220 = vmatprep.subr.bf16.mxu1 %v2402_v57 }
  0x60   : > { %2177 = vmatmul.mubr.bf16.vlgmr.msra.gmra.mxu0 %v585_v54  ;;  %v2436_v54 = vld [vmem:[%s2592_s17 + $0x1c8] sm:$0xff]  }
  0x61   : > { %2201 = vmatpush3.bf16.msra.mxu0 %v2395_v50  ;;  %2216 = vmatprep.mubr.bf16.mxu0 %v2413_v59  ;;  %v2430_v50 = vld [vmem:[%s2592_s17 + $0x1d8] sm:$0xff]  }
  0x62   : > { %2202 = vmatprep.subr.bf16.mxu0 %v2397_v55  ;;  %2197 = vmatmul.mubr.bf16.vlgmr.msra.gmra.mxu1 %v2401_v61  ;;  %v2435_v59 = vld [vmem:[%s2592_s17 + $0x238] sm:$0xff]  }
  0x63   : > { %2221 = vmatpush3.bf16.msra.mxu1 %v2402_v57  ;;  %2236 = vmatprep.mubr.bf16.mxu1 %v1016_v63  ;;  %v2448_v57 = vld [vmem:[%s2579_s6 + $0x8] sm:$0x7f]  }
  0x64   : > { %2222 = vmatprep.subr.bf16.mxu1 %v2404_v62  ;;  %v1480_v61 = vrot.slane %v2448_v57, 3 }
  0x65   : > { %2203 = vmatpush3.bf16.msra.mxu0 %v2397_v55  ;;  %v2431_v55 = vld [vmem:[%s2592_s17 + $0x180] sm:$0xff]  }
  0x66   : > { %2204 = vmatprep.subr.bf16.mxu0 %v2399_v0  ;;  %v1481_v63 = vsel %vm1478_vm2, %v1479_v60, %v1480_v61 }
  0x67   : > { %2223 = vmatpush3.bf16.msra.mxu1 %v2404_v62  ;;  %v2437_v62 = vld [vmem:[%s2592_s17 + $0x230] sm:$0xff]  }
  0x68   : > { %2224 = vmatprep.subr.bf16.mxu1 %v2406_v1 }
  0x69   : > { %2205 = vmatpush3.bf16.msra.mxu0 %v2399_v0  ;;  %v2439_v0 = vld [vmem:[%s2592_s17 + $0x228] sm:$0xff]  }
  0x6a   : > { %2206 = vmatprep.subr.bf16.mxu0 %v2403_v2 }
  0x6b   : > { %2225 = vmatpush3.bf16.msra.mxu1 %v2406_v1  ;;  %v2442_v1 = vld [vmem:[%s2592_s17 + $0x220] sm:$0xff]  }
  0x6c   : > { %2226 = vmatprep.subr.bf16.mxu1 %v2408_v3 }
  0x6d   : > { %2207 = vmatpush3.bf16.msra.mxu0 %v2403_v2  ;;  %v2443_v2 = vld [vmem:[%s2592_s17 + $0x218] sm:$0xff]  }
  0x6e   : > { %2208 = vmatprep.subr.bf16.mxu0 %v2405_v4 }
  0x6f   : > { %2227 = vmatpush3.bf16.msra.mxu1 %v2408_v3  ;;  %v2444_v3 = vld [vmem:[%s2592_s17 + $0x210] sm:$0xff]  }
  0x70   : > { %2228 = vmatprep.subr.bf16.mxu1 %v2410_v6 }
  0x71   : > { %2209 = vmatpush3.bf16.msra.mxu0 %v2405_v4  ;;  %v2445_v4 = vld [vmem:[%s2592_s17 + $0x208] sm:$0xff]  }
  0x72   : > { %2210 = vmatprep.subr.bf16.mxu0 %v2407_v5 }
  0x73   : > { %2229 = vmatpush3.bf16.msra.mxu1 %v2410_v6  ;;  %v281_v6 = vld [vmem:[#allocation2 + $0x8] sm:$0xff] }
  0x74   : > { %2230 = vmatprep.subr.bf16.mxu1 %v2412_v12 }
  0x75   : > { %2211 = vmatpush3.bf16.msra.mxu0 %v2407_v5  ;;  %v2446_v5 = vld [vmem:[%s2592_s17 + $0x200] sm:$0xff]  }
  0x76   : > { %2212 = vmatprep.subr.bf16.mxu0 %v2409_v10 }
  0x77   : > { %2231 = vmatpush3.bf16.msra.mxu1 %v2412_v12 }
  0x78   : > { %2232 = vmatprep.subr.bf16.mxu1 %v2416_v17 }
  0x79   : > { %2213 = vmatpush3.bf16.msra.mxu0 %v2409_v10 }
  0x7a   : > { %2214 = vmatprep.subr.bf16.mxu0 %v2411_v22 }
  0x7b   : > { %2233 = vmatpush3.bf16.msra.mxu1 %v2416_v17 }
  0x7c   : > { %2234 = vmatprep.subr.bf16.mxu1 %v2418_v27 }
  0x7d   : > { %2215 = vmatpush3.bf16.msra.mxu0 %v2411_v22 }
  0x7e   : > { %2240 = vmatprep.subr.bf16.mxu0 %v2415_v32 }
  0x7f   : > { %2235 = vmatpush3.bf16.msra.mxu1 %v2418_v27 }
  0x80   : > { %2217 = vmatmul.mubr.bf16.vlgmr.msra.gmra.mxu0 %v2414_v36  ;;  %2260 = vmatprep.subr.bf16.mxu1 %v2422_v37 }
  0x81   : > { %2241 = vmatpush3.bf16.msra.mxu0 %v2415_v32  ;;  %2256 = vmatprep.mubr.bf16.mxu0 %v1178_v42 }
  0x82   : > { %2242 = vmatprep.subr.bf16.mxu0 %v2417_v40  ;;  %2237 = vmatmul.mubr.bf16.vlgmr.msra.gmra.mxu1 %v1019_v41 }
  0x83   : > { %2261 = vmatpush3.bf16.msra.mxu1 %v2422_v37  ;;  %2276 = vmatprep.mubr.bf16.mxu1 %v1336_v44 }
  0x84   : > { %2262 = vmatprep.subr.bf16.mxu1 %v2424_v43 }
  0x85   : > { %2243 = vmatpush3.bf16.msra.mxu0 %v2417_v40 }
  0x86   : > { %2244 = vmatprep.subr.bf16.mxu0 %v2419_v45 }
  0x87   : > { %2263 = vmatpush3.bf16.msra.mxu1 %v2424_v43 }
  0x88   : > { %2264 = vmatprep.subr.bf16.mxu1 %v2426_v46 }
  0x89   : > { %2245 = vmatpush3.bf16.msra.mxu0 %v2419_v45 }
  0x8a   : > { %2246 = vmatprep.subr.bf16.mxu0 %v2423_v47 }
  0x8b   : > { %2265 = vmatpush3.bf16.msra.mxu1 %v2426_v46 }
  0x8c   : > { %2266 = vmatprep.subr.bf16.mxu1 %v2428_v48 }
  0x8d   : > { %2247 = vmatpush3.bf16.msra.mxu0 %v2423_v47 }
  0x8e   : > { %2248 = vmatprep.subr.bf16.mxu0 %v2425_v49 }
  0x8f   : > { %2267 = vmatpush3.bf16.msra.mxu1 %v2428_v48 }
  0x90   : > { %2268 = vmatprep.subr.bf16.mxu1 %v2430_v50 }
  0x91   : > { %2249 = vmatpush3.bf16.msra.mxu0 %v2425_v49 }
  0x92   : > { %2250 = vmatprep.subr.bf16.mxu0 %v2427_v51 }
  0x93   : > { %2269 = vmatpush3.bf16.msra.mxu1 %v2430_v50 }
  0x94   : > { %2270 = vmatprep.subr.bf16.mxu1 %v2432_v52 }
  0x95   : > { %2251 = vmatpush3.bf16.msra.mxu0 %v2427_v51 }
  0x96   : > { %2252 = vmatprep.subr.bf16.mxu0 %v2429_v53 }
  0x97   : > { %2271 = vmatpush3.bf16.msra.mxu1 %v2432_v52 }
  0x98   : > { %2272 = vmatprep.subr.bf16.mxu1 %v2436_v54 }
  0x99   : > { %2253 = vmatpush3.bf16.msra.mxu0 %v2429_v53 }
  0x9a   : > { %2254 = vmatprep.subr.bf16.mxu0 %v2431_v55 }
  0x9b   : > { %2273 = vmatpush3.bf16.msra.mxu1 %v2436_v54 }
  0x9c   : > { %2274 = vmatprep.subr.bf16.mxu1 %v2438_v58 }
  0x9d   : > { %2255 = vmatpush3.bf16.msra.mxu0 %v2431_v55 }
  0x9e   : > { %2280 = vmatprep.subr.bf16.mxu0 %v2435_v59 }
  0x9f   : > { %2275 = vmatpush3.bf16.msra.mxu1 %v2438_v58 }
  0xa0   : > { %2257 = vmatmul.mubr.bf16.vlgmr.msra.gmra.mxu0 %v2670_v35 }
  0xa1   : > { %2281 = vmatpush3.bf16.msra.mxu0 %v2435_v59  ;;  %2296 = vmatprep.mubr.bf16.mxu0 %v1481_v63 }
  0xa2   : > { %2282 = vmatprep.subr.bf16.mxu0 %v2437_v62  ;;  %2277 = vmatmul.mubr.bf16.vlgmr.msra.gmra.mxu1 %v2674_v39 }
  0xa5   : > { %2283 = vmatpush3.bf16.msra.mxu0 %v2437_v62 }
  0xa6   : > { %2284 = vmatprep.subr.bf16.mxu0 %v2439_v0 }
  0xa9   : > { %2285 = vmatpush3.bf16.msra.mxu0 %v2439_v0 }
  0xaa   : > { %2286 = vmatprep.subr.bf16.mxu0 %v2442_v1 }
  0xad   : > { %2287 = vmatpush3.bf16.msra.mxu0 %v2442_v1 }
  0xae   : > { %2288 = vmatprep.subr.bf16.mxu0 %v2443_v2 }
  0xb1   : > { %2289 = vmatpush3.bf16.msra.mxu0 %v2443_v2 }
  0xb2   : > { %2290 = vmatprep.subr.bf16.mxu0 %v2444_v3 }
  0xb5   : > { %2291 = vmatpush3.bf16.msra.mxu0 %v2444_v3 }
  0xb6   : > { %2292 = vmatprep.subr.bf16.mxu0 %v2445_v4 }
  0xb9   : > { %2293 = vmatpush3.bf16.msra.mxu0 %v2445_v4 }
  0xba   : > { %2294 = vmatprep.subr.bf16.mxu0 %v2446_v5 }
  0xbd   : > { %2295 = vmatpush3.bf16.msra.mxu0 %v2446_v5 }
  0xc0   : > { %2297 = vmatmul.mubr.bf16.vlgmr.msra.gmra.mxu0 %v1480_v61 }
 0x100   : > { %v2138_v7 = vpop.f32.mrf.mxu0 }
 0x101   : > { %v390_v9 = vadd.f32 %v2138_v7, %v281_v6  ;;  %v2158_v12 = vpop.f32.mrf.mxu1 }
 0x102   : > { %v374_v10 = vpop.f32.mrf.mxu0 }
 0x103   : > { %v388_v11 = vadd.f32 %v374_v10, %v279_v8  ;;  %v529_v15 = vadd.f32 %v2158_v12, %v390_v9  ;;  %v513_v16 = vpop.f32.mrf.mxu1 }
 0x104   : > { %v2139_v13 = vpop.f32.mrf.mxu0 }
 0x105   : > { %v527_v18 = vadd.f32 %v513_v16, %v388_v11  ;;  %v2159_v20 = vpop.f32.mrf.mxu1 }
 0x106   : > { %v377_v17 = vpop.f32.mrf.mxu0 }
 0x107   : > { %v389_v19 = vadd.f32 %v377_v17, %v280_v14  ;;  %v516_v21 = vpop.f32.mrf.mxu1 }
 0x109   : > { %v528_v22 = vadd.f32 %v516_v21, %v389_v19 }
 0x120   : > { %v2178_v23 = vpop.f32.mrf.mxu0 }
 0x121   : > { %v686_v24 = vadd.f32 %v2178_v23, %v529_v15 }
 0x122   : > { %v670_v25 = vpop.f32.mrf.mxu0  ;;  %v2198_v27 = vpop.f32.mrf.mxu1 }
 0x123   : > { %v684_v26 = vadd.f32 %v670_v25, %v527_v18  ;;  %v825_v29 = vadd.f32 %v2198_v27, %v686_v24 }
 0x124   : > { %v2179_v28 = vpop.f32.mrf.mxu0  ;;  %v809_v30 = vpop.f32.mrf.mxu1 }
 0x125   : > { %v823_v31 = vadd.f32 %v809_v30, %v684_v26 }
 0x126   : > { %v2199_v32 = vpop.f32.mrf.mxu1  ;;  %v673_v33 = vpop.f32.mrf.mxu0 }
 0x127   : > { %v685_v49 = vadd.f32 %v673_v33, %v528_v22 }
 0x128   : > { %v812_v35 = vpop.f32.mrf.mxu1 }
 0x129   : > { %v824_v52 = vadd.f32 %v812_v35, %v685_v49 }
 0x140   : > { %v2218_v34 = vpop.f32.mrf.mxu0 }
 0x141   : > { %v964_v50 = vadd.f32 %v2218_v34, %v825_v29 }
 0x142   : > { %v948_v36 = vpop.f32.mrf.mxu0  ;;  %v2238_v37 = vpop.f32.mrf.mxu1 }
 0x143   : > { %v962_v51 = vadd.f32 %v948_v36, %v823_v31  ;;  %v1120_v53 = vadd.f32 %v2238_v37, %v964_v50 }
 0x144   : > { %v2219_v38 = vpop.f32.mrf.mxu0  ;;  %v1104_v39 = vpop.f32.mrf.mxu1 }
 0x145   : > { %v1118_v55 = vadd.f32 %v1104_v39, %v962_v51 }
 0x146   : > { %v2239_v40 = vpop.f32.mrf.mxu1  ;;  %v951_v41 = vpop.f32.mrf.mxu0 }
 0x147   : > { %v963_v54 = vadd.f32 %v951_v41, %v824_v52 }
 0x148   : > { %v1107_v43 = vpop.f32.mrf.mxu1 }
 0x149   : > { %v1119_v59 = vadd.f32 %v1107_v43, %v963_v54 }
 0x160   : > { %v2258_v42 = vpop.f32.mrf.mxu0 }
 0x161   : > { %v1279_v56 = vadd.f32 %v2258_v42, %v1120_v53 }
 0x162   : > { %v1263_v44 = vpop.f32.mrf.mxu0  ;;  %v2278_v45 = vpop.f32.mrf.mxu1 }
 0x163   : > { %v1277_v57 = vadd.f32 %v1263_v44, %v1118_v55  ;;  %v1437_v60 = vadd.f32 %v2278_v45, %v1279_v56 }
 0x164   : > { %v2259_v46 = vpop.f32.mrf.mxu0  ;;  %v1421_v47 = vpop.f32.mrf.mxu1 }
 0x165   : > { %v1435_v63 = vadd.f32 %v1421_v47, %v1277_v57 }
 0x166   : > { %v2279_v48 = vpop.f32.mrf.mxu1  ;;  %v1266_v58 = vpop.f32.mrf.mxu0 }
 0x167   : > { %v1278_v62 = vadd.f32 %v1266_v58, %v1119_v59 }
 0x168   : > { %v1424_v1 = vpop.f32.mrf.mxu1 }
 0x169   : > { %v1436_v5 = vadd.f32 %v1424_v1, %v1278_v62 }
 0x180   : > { %v2298_v61 = vpop.f32.mrf.mxu0 }
 0x181   : > { %v1582_v0 = vadd.f32 %v2298_v61, %v1437_v60 }
 0x182   : > { %v1566_v2 = vpop.f32.mrf.mxu0 }
 0x183   : > { %1585 = vst [vmem:[#allocation2 + $0x8] sm:$0xff] %v1582_v0  ;;  %v1580_v3 = vadd.f32 %v1566_v2, %v1435_v63 }
 0x184   : > { %v2299_v4 = vpop.f32.mrf.mxu0 }
 0x185   : > { %1583 = vst [vmem:[#allocation2 + $0x10] sm:$0xff] %v1580_v3  ;;  %1589 = sbr.rel (%p2012_p10) target bundleno = 410 (0x19a), region = 44 }
 0x186   : > { %v1569_v6 = vpop.f32.mrf.mxu0 }
 0x187   : > { %v1581_v7 = vadd.f32 %v1569_v6, %v1436_v5 }
 0x189   : > { %1584 = vst [vmem:[#allocation2] sm:$0xff] %v1581_v7 }
 0x18a   : > { %v2013_v10 = vld [vmem:[%s2737_s2] ss:$0 sm:$0xff]  ;;  %v1592_v14 = vld [vmem:[#allocation2 + $0x8] sm:$0xff] }
 0x18b   : > { %v2014_v13 = vld [vmem:[%s2738_s3] ss:$0 sm:$0xff]  ;;  %v1602_v15 = vmul.f32 %v2013_v10, %v1592_v14 }
 0x18c   : > { %v1590_v8 = vld [vmem:[#allocation2 + $0x10] sm:$0xff] }
 0x18d   : > { %v1600_v11 = vmul.f32 %v2013_v10, %v1590_v8  ;;  %v1612_v18 = vadd.f32 %v2014_v13, %v1602_v15 }
 0x18f   : > { %v1610_v16 = vadd.f32 %v2014_v13, %v1600_v11  ;;  %v1615_v21 = vmax.f32 %v1612_v18, 0.0 }
 0x190   : > { %v1591_v9 = vld [vmem:[#allocation2] sm:$0xff] }
 0x191   : > { %v1601_v12 = vmul.f32 %v2013_v10, %v1591_v9  ;;  %v1613_v19 = vmax.f32 %v1610_v16, 0.0  ;;  %v2024_v23 = vpack.c.bf16 %v1615_v21, %v1615_v21 }
 0x193   : > { %v1611_v17 = vadd.f32 %v2014_v13, %v1601_v12  ;;  %1631 = vst [vmem:[%s2584_s12 + $0x8] sm:$0xf] %v2024_v23 }
 0x195   : > { %v1614_v20 = vmax.f32 %v1611_v17, 0.0 }
 0x197   : > { %v2028_v22 = vpack.c.bf16 %v1614_v20, %v1613_v19 }
 0x199   : > { %2029 = vst [vmem:[%s2584_s12] sm:$0xff] %v2028_v22  }
 0x19a PF: > { %s14_s21 = sadd.s32 1, %s2503_s21   ;;  %s2740_s15 = smov %s2491_s18 }
 0x19b   : > { %p11_p11 = scmp.ge.s32.totalorder %s14_s21, 26   ;;  %s2741_s16 = smov %s2495_s19 }
 0x19c   : > { %s2742_s17 = smov %s2499_s20  ;;  %s2743_s18 = smov %s2747_s22 }
 0x19d   : > { %s2744_s19 = smov %s2751_s23  ;;  %s2745_s20 = smov %s2755_s24 }
 0x19e   :  { %13 = sbr.rel (!%p11_p11) target bundleno = 4 (0x4), region = 86 }

</bundles_post_ra>
